<compile_context>
chip_gen: v7x
topology: tpu7x:2x2x1
jax: 0.10.0
libtpu: 0.0.40
codegen_flags: <defaults>
</compile_context>

<pallas_src>
import jax
import jax.numpy as jnp
from jax.experimental import pallas as pl
from jax.experimental.pallas import tpu as pltpu

_ACT_DTYPE = jnp.bfloat16   # inter-layer activation storage dtype (halves HBM traffic)
_MXU_DTYPE = jnp.bfloat16   # MXU operand dtype (f32 accumulation via preferred_element_type)
_VMEM_LIMIT = 32 * 1024 * 1024   # safe on v7x (64 MiB physical); tiles here use far less


def _round_up(x, m):
    return (x + m - 1) // m * m


def _cdiv(a, b):
    return -(-a // b)


# ----------------------------------------------------------------------------
# Pallas kernels
# ----------------------------------------------------------------------------
def _make_mm_bn_kernel(relu: bool, add_res: bool):
    """Tiled matmul with K-reduction grid axis and f32 VMEM accumulator.

    The BN affine (+residual) (+ReLU) epilogue runs ONLY in the k==last finalize
    branch, keeping the inner K loop pure MXU work.
    """
    def kernel(*refs):
        if add_res:
            x_ref, w_ref, s_ref, b_ref, r_ref, o_ref, acc_ref = refs
        else:
            x_ref, w_ref, s_ref, b_ref, o_ref, acc_ref = refs
            r_ref = None
        k = pl.program_id(2)

        @pl.when(k == 0)
        def _():
            acc_ref[...] = jnp.zeros_like(acc_ref)

        acc_ref[...] += jnp.dot(x_ref[...], w_ref[...],
                                preferred_element_type=jnp.float32)

        @pl.when(k == pl.num_programs(2) - 1)
        def _():
            y = acc_ref[...] * s_ref[...] + b_ref[...]
            if add_res:
                y = y + r_ref[...].astype(jnp.float32)
            if relu:
                y = jnp.maximum(y, 0.0)
            o_ref[...] = y.astype(o_ref.dtype)

    return kernel


def _make_conv_bn_kernel(KH: int, Ho: int, relu: bool, add_res: bool):
    """Fused stride-1 conv + BN (+residual) (+ReLU) for one batch image.

    x block:   (1, Hp, Wp*Cin)         -- whole padded image, read once
    w block:   (KH, Wp*Cin, Wo*Cout)   -- block-banded weight (kw, cin folded in)
    out block: (1, Ho, Wo*Cout)        -- lane-dense output layout
    """
    def kernel(*refs):
        if add_res:
            x_ref, w_ref, s_ref, b_ref, r_ref, o_ref = refs
        else:
            x_ref, w_ref, s_ref, b_ref, o_ref = refs
            r_ref = None
        xv = x_ref[0]                                       # (Hp, Wp*Cin)
        acc = jnp.dot(xv[0:Ho, :], w_ref[0],
                      preferred_element_type=jnp.float32)
        for kh in range(1, KH):                             # static unroll
            acc += jnp.dot(xv[kh:kh + Ho, :], w_ref[kh],
                           preferred_element_type=jnp.float32)
        y = acc * s_ref[...] + b_ref[...]
        if add_res:
            y = y + r_ref[0].astype(jnp.float32)
        if relu:
            y = jnp.maximum(y, 0.0)
        o_ref[0] = y.astype(o_ref.dtype)

    return kernel


def _make_maxpool_kernel(ksize: int, stride: int, Ho: int, WoC: int, C: int):
    """3x3 stride-2 max pool over phase-decomposed input (unit-stride slices only)."""
    s = stride

    def kernel(x_ref, o_ref):
        v = x_ref[0]                                        # (s*s, PH, PW*C)
        phases = [v[p] for p in range(s * s)]               # each (PH, PW*C)
        y = None
        for kh in range(ksize):
            for kw in range(ksize):
                p = (kh % s) * s + (kw % s)
                r0 = kh // s
                c0 = (kw // s) * C
                win = phases[p][r0:r0 + Ho, c0:c0 + WoC]
                y = win if y is None else jnp.maximum(y, win)
        o_ref[0] = y

    return kernel


def _head_kernel(x_ref, w_ref, b_ref, o_ref):
    # Fused: global average pool + Linear + LogSoftmax (single small block).
    x = x_ref[...].astype(jnp.float32)                       # (N, HW, C)
    pooled = jnp.mean(x, axis=1)                             # (N, C) f32
    y = jnp.dot(pooled.astype(_MXU_DTYPE), w_ref[...],
                preferred_element_type=jnp.float32) + b_ref[...]
    m = jnp.max(y, axis=-1, keepdims=True)
    s = y - m
    lse = jnp.log(jnp.sum(jnp.exp(s), axis=-1, keepdims=True))
    o_ref[...] = (s - lse).astype(o_ref.dtype)


# ----------------------------------------------------------------------------
# Tiled matmul wrapper (used by 1x1 convs and the strided im2col fallback)
# ----------------------------------------------------------------------------
def _choose_tiles(M, K, N):
    """Pad each dim to its alignment quantum FIRST, then pick tile sizes that
    exactly tile the (minimally re-padded) extent; waste <= one quantum per tile."""
    def pick(d, quantum, cap, min_tiles=1):
        dp = _round_up(max(d, 1), quantum)
        g = max(min_tiles, _cdiv(dp, cap))
        t = _round_up(_cdiv(dp, g), quantum)
        return t, g, t * g

    tm, gm, Mp = pick(M, 16, 512)
    tk, gk, Kp = pick(K, 128, 1024)
    tn, gn, Np = pick(N, 128, 512)
    # v7x megacore: make sure the parallel axes expose >= 2 programs when possible.
    if gm * gn == 1 and Mp >= 32:
        tm, gm, Mp = pick(M, 16, 512, min_tiles=2)
    return (tm, tk, tn), (gm, gk, gn), (Mp, Kp, Np)


def mm_bn(x, w, scale, shift, residual=None, relu=True, out_dtype=_ACT_DTYPE):
    """x:(M,K) @ w:(K,N) * scale + shift [+ residual] [ReLU] -> (M,N), tiled on TPU."""
    M, K = x.shape
    _, N = w.shape
    (tm, tk, tn), (gm, gk, gn), (Mp, Kp, Np) = _choose_tiles(M, K, N)

    xp = jnp.pad(x.astype(_MXU_DTYPE), ((0, Mp - M), (0, Kp - K)))
    wp = jnp.pad(w.astype(_MXU_DTYPE), ((0, Kp - K), (0, Np - N)))
    sp = jnp.pad(scale.reshape(1, N).astype(jnp.float32), ((0, 0), (0, Np - N)))
    bp = jnp.pad(shift.reshape(1, N).astype(jnp.float32), ((0, 0), (0, Np - N)))

    add_res = residual is not None
    args = [xp, wp, sp, bp]
    in_specs = [
        pl.BlockSpec((tm, tk), lambda i, j, k: (i, k)),
        pl.BlockSpec((tk, tn), lambda i, j, k: (k, j)),
        pl.BlockSpec((1, tn), lambda i, j, k: (0, j)),
        pl.BlockSpec((1, tn), lambda i, j, k: (0, j)),
    ]
    if add_res:
        rp = jnp.pad(residual.astype(_ACT_DTYPE), ((0, Mp - M), (0, Np - N)))
        args.append(rp)
        in_specs.append(pl.BlockSpec((tm, tn), lambda i, j, k: (i, j)))

    bytes_accessed = (Mp * Kp * 2 * gn + Kp * Np * 2 * gm
                      + Mp * Np * jnp.dtype(out_dtype).itemsize
                      + (Mp * Np * 2 if add_res else 0))

    out = pl.pallas_call(
        _make_mm_bn_kernel(relu, add_res),
        out_shape=jax.ShapeDtypeStruct((Mp, Np), out_dtype),
        grid_spec=pltpu.PrefetchScalarGridSpec(
            num_scalar_prefetch=0,
            grid=(gm, gn, gk),
            in_specs=in_specs,
            out_specs=pl.BlockSpec((tm, tn), lambda i, j, k: (i, j)),
            scratch_shapes=[pltpu.VMEM((tm, tn), jnp.float32)],
        ),
        compiler_params=pltpu.CompilerParams(
            dimension_semantics=("parallel", "parallel", "arbitrary"),
            vmem_limit_bytes=_VMEM_LIMIT,
        ),
        cost_estimate=pl.CostEstimate(
            flops=2 * Mp * Np * Kp, transcendentals=0,
            bytes_accessed=int(bytes_accessed)),
    )(*args)
    return out[:M, :N]


# ----------------------------------------------------------------------------
# Convolution wrappers
# ----------------------------------------------------------------------------
def _conv_bn_fused_s1(x, w, scale, shift, padding, relu, residual):
    """Stride-1 KHxKW conv fused with BN / residual / ReLU; activation read once."""
    N, H, W_, Cin = x.shape
    KH, KW, _, Cout = w.shape
    Hp, Wp = H + 2 * padding, W_ + 2 * padding
    Ho, Wo = Hp - KH + 1, Wp - KW + 1

    xv = jnp.pad(x.astype(_MXU_DTYPE),
                 ((0, 0), (padding, padding), (padding, padding), (0, 0)))
    xv = xv.reshape(N, Hp, Wp * Cin)

    # Block-banded weight: Wbig[kh, iw*Cin + c, ow*Cout + co] = w[kh, iw - ow, c, co]
    # for 0 <= iw-ow < KW, zero otherwise.  Folds the (kw, cin) reduction into a
    # single 2-D matmul per kh and yields a lane-dense (ow, cout) output axis.
    wk = w.astype(_MXU_DTYPE).reshape(KH, KW * Cin, Cout)
    cols = [jnp.pad(wk, ((0, 0), (ow * Cin, (Wp - KW - ow) * Cin), (0, 0)))
            for ow in range(Wo)]
    wbig = jnp.concatenate(cols, axis=2)                     # (KH, Wp*Cin, Wo*Cout)

    s_big = jnp.tile(scale.reshape(-1).astype(jnp.float32), Wo).reshape(1, Wo * Cout)
    b_big = jnp.tile(shift.reshape(-1).astype(jnp.float32), Wo).reshape(1, Wo * Cout)

    add_res = residual is not None
    args = [xv, wbig, s_big, b_big]
    in_specs = [
        pl.BlockSpec((1, Hp, Wp * Cin), lambda n: (n, 0, 0)),
        pl.BlockSpec((KH, Wp * Cin, Wo * Cout), lambda n: (0, 0, 0)),
        pl.BlockSpec((1, Wo * Cout), lambda n: (0, 0)),
        pl.BlockSpec((1, Wo * Cout), lambda n: (0, 0)),
    ]
    if add_res:
        args.append(residual.astype(_ACT_DTYPE).reshape(N, Ho, Wo * Cout))
        in_specs.append(pl.BlockSpec((1, Ho, Wo * Cout), lambda n: (n, 0, 0)))

    out = pl.pallas_call(
        _make_conv_bn_kernel(KH, Ho, relu, add_res),
        out_shape=jax.ShapeDtypeStruct((N, Ho, Wo * Cout), _ACT_DTYPE),
        grid=(N,),
        in_specs=in_specs,
        out_specs=pl.BlockSpec((1, Ho, Wo * Cout), lambda n: (n, 0, 0)),
        compiler_params=pltpu.CompilerParams(
            dimension_semantics=("parallel",),
            vmem_limit_bytes=_VMEM_LIMIT),
        cost_estimate=pl.CostEstimate(
            flops=2 * N * KH * Ho * (Wp * Cin) * (Wo * Cout),
            transcendentals=0,
            bytes_accessed=int(N * Hp * Wp * Cin * 2
                               + KH * Wp * Cin * Wo * Cout * 2
                               + N * Ho * Wo * Cout * 2 * (2 if add_res else 1))),
    )(*args)
    return out.reshape(N, Ho, Wo, Cout)


def conv2d_bn(x, w, scale, shift, stride=1, padding=0, relu=True, residual=None):
    """NHWC conv (bias=False) fused with BN affine / residual / ReLU."""
    N, H, W_, Cin = x.shape
    KH, KW, _, Cout = w.shape

    # 1x1 convolutions are plain (strided-sliced) matmuls -- zero im2col expansion.
    if KH == 1 and KW == 1 and padding == 0:
        xs = x if stride == 1 else x[:, ::stride, ::stride, :]
        n, h, w_, _ = xs.shape
        res = None if residual is None else residual.reshape(n * h * w_, Cout)
        out = mm_bn(xs.reshape(n * h * w_, Cin), w.reshape(Cin, Cout),
                    scale, shift, residual=res, relu=relu)
        return out.reshape(n, h, w_, Cout)

    Ho = (H + 2 * padding - KH) // stride + 1
    Wo = (W_ + 2 * padding - KW) // stride + 1
    Hp, Wp = H + 2 * padding, W_ + 2 * padding

    fused_ok = (stride == 1
                and Wo * Cout <= 1024
                and (2 * Hp * Wp * Cin + KH * Wp * Cin * Wo * Cout
                     + 4 * Ho * Wo * Cout) * 2 < 8 * 1024 * 1024)
    if fused_ok:
        return _conv_bn_fused_s1(x, w, scale, shift, padding, relu, residual)

    # Fallback (strided spatial convs, e.g. the 7x7 stride-2 trunk): XLA im2col
    # in bf16 feeding the tiled matmul kernel.
    # TODO(synk): fold strided window extraction in-kernel via stride-phase
    # decomposition to remove this remaining KH*KW expansion.
    xb = x.astype(_MXU_DTYPE)
    xp = jnp.pad(xb, ((0, 0), (padding, padding), (padding, padding), (0, 0)))
    cols = []
    for kh in range(KH):
        for kw in range(KW):
            cols.append(
                xp[:, kh:kh + stride * (Ho - 1) + 1:stride,
                      kw:kw + stride * (Wo - 1) + 1:stride, :])
    patches = jnp.concatenate(cols, axis=-1).reshape(N * Ho * Wo, KH * KW * Cin)
    wmat = w.reshape(KH * KW * Cin, Cout)
    res = None if residual is None else residual.reshape(N * Ho * Wo, Cout)
    out = mm_bn(patches, wmat, scale, shift, residual=res, relu=relu)
    return out.reshape(N, Ho, Wo, Cout)


# ----------------------------------------------------------------------------
# MaxPool
# ----------------------------------------------------------------------------
def maxpool2d(x, ksize=3, stride=2, padding=1):
    """Max pool via stride-phase decomposition.

    The padded activation is read exactly once from HBM (the s*s phase slabs are
    disjoint); the ksize*ksize window max is taken with static unit-stride slices
    in-kernel and the output is stored as (N, Ho, Wo*C)."""
    N, H, W_, C = x.shape
    s = stride
    Ho = (H + 2 * padding - ksize) // s + 1
    Wo = (W_ + 2 * padding - ksize) // s + 1
    PH = Ho + (ksize - 1) // s
    PW = Wo + (ksize - 1) // s

    xp = jnp.pad(x, ((0, 0), (padding, padding), (padding, padding), (0, 0)),
                 constant_values=-jnp.inf)
    phases = []
    for rh in range(s):
        for rw in range(s):
            ph = xp[:, rh::s, rw::s, :]
            pad_h = max(0, PH - ph.shape[1])
            pad_w = max(0, PW - ph.shape[2])
            ph = jnp.pad(ph, ((0, 0), (0, pad_h), (0, pad_w), (0, 0)),
                         constant_values=-jnp.inf)
            phases.append(ph[:, :PH, :PW, :])
    stk = jnp.stack(phases, axis=1).reshape(N, s * s, PH, PW * C)

    out = pl.pallas_call(
        _make_maxpool_kernel(ksize, s, Ho, Wo * C, C),
        out_shape=jax.ShapeDtypeStruct((N, Ho, Wo * C), x.dtype),
        grid=(N,),
        in_specs=[pl.BlockSpec((1, s * s, PH, PW * C), lambda n: (n, 0, 0, 0))],
        out_specs=pl.BlockSpec((1, Ho, Wo * C), lambda n: (n, 0, 0)),
        compiler_params=pltpu.CompilerParams(dimension_semantics=("parallel",)),
    )(stk)
    return out.reshape(N, Ho, Wo, C)


# ----------------------------------------------------------------------------
# Head: global-avg-pool + Linear + LogSoftmax
# ----------------------------------------------------------------------------
def head_pool_fc_logsoftmax(x, w, b):
    """Fused adaptive-avg-pool(1,1) + flatten + Linear + LogSoftmax in one kernel."""
    N, H, W_, C = x.shape
    xr = x.reshape(N, H * W_, C)
    Fin, nc = w.shape
    b2 = b.reshape(1, nc).astype(jnp.float32)

    # TODO(synk): block over batch / channels if this head grows (real ResNet
    # C=512, large batch); a single full-block call is fine at these sizes.
    def fs(shape):
        nd = len(shape)
        return pl.BlockSpec(tuple(shape), lambda i, _nd=nd: (0,) * _nd)

    return pl.pallas_call(
        _head_kernel,
        out_shape=jax.ShapeDtypeStruct((N, nc), jnp.float32),
        grid=(1,),
        in_specs=[fs(xr.shape), fs((Fin, nc)), fs((1, nc))],
        out_specs=fs((N, nc)),
    )(xr, w.astype(_MXU_DTYPE), b2)


# ----------------------------------------------------------------------------
# Parameter construction (deterministic, mirrors the PyTorch __init__ logic)
# ----------------------------------------------------------------------------
class _KeyGen:
    def __init__(self, key):
        self.key = key

    def __call__(self):
        self.key, sub = jax.random.split(self.key)
        return sub


def _init_conv(kg, kh, kw, cin, cout):
    return 0.1 * jax.random.normal(kg(), (kh, kw, cin, cout), jnp.float32)


def _init_bn(kg, c, eps=1e-5):
    gamma = 1.0 + 0.1 * jax.random.normal(kg(), (c,), jnp.float32)
    beta = 0.1 * jax.random.normal(kg(), (c,), jnp.float32)
    mean = 0.1 * jax.random.normal(kg(), (c,), jnp.float32)
    var = 1.0 + 0.1 * jnp.abs(jax.random.normal(kg(), (c,), jnp.float32))
    scale = gamma / jnp.sqrt(var + eps)
    shift = beta - mean * scale
    return scale.reshape(1, c), shift.reshape(1, c)


def _make_block_params(kg, num_incoming, num_input, num_output, downsample, bottleneck):
    """Mirrors ResNetBlock.__init__."""
    blk = {'bottleneck': bottleneck, 'downsample': downsample}
    first_stride = 1
    if downsample:
        blk['ds_conv'] = _init_conv(kg, 1, 1, num_incoming, num_output)
        blk['ds_bn'] = _init_bn(kg, num_output)
        blk['ds_stride'] = 2
        first_stride = 2
    if num_output != num_incoming:
        blk['ds_conv'] = _init_conv(kg, 1, 1, num_incoming, num_output)
        blk['ds_bn'] = _init_bn(kg, num_output)
        blk['ds_stride'] = 1
        blk['downsample'] = True
    if bottleneck:
        blk['conv1'] = _init_conv(kg, 1, 1, num_incoming, num_input)
        blk['bn1'] = _init_bn(kg, num_input)
        blk['conv2'] = _init_conv(kg, 3, 3, num_input, num_input)
        blk['bn2'] = _init_bn(kg, num_input)
        blk['conv3'] = _init_conv(kg, 1, 1, num_input, num_output)
        blk['bn3'] = _init_bn(kg, num_output)
        blk['stride1'] = 1
    else:
        blk['conv1'] = _init_conv(kg, 3, 3, num_incoming, num_input)
        blk['bn1'] = _init_bn(kg, num_input)
        blk['conv2'] = _init_conv(kg, 3, 3, num_input, num_output)
        blk['bn2'] = _init_bn(kg, num_output)
        blk['stride1'] = first_stride
    return blk


def build_resnet_params(key, blocks_per_layer, num_classes, num_channels,
                        initial_num_input_filters=8, initial_num_output_filters=8,
                        bottleneck=False):
    """Mirrors ResNet.__init__ / _build_layer (including its quirky downsample logic)."""
    kg = _KeyGen(key)
    params = {'bottleneck': bottleneck}
    params['trunk_conv'] = _init_conv(kg, 7, 7, num_channels, initial_num_input_filters)
    params['trunk_bn'] = _init_bn(kg, initial_num_input_filters)

    num_input = initial_num_input_filters
    num_output = initial_num_output_filters
    num_incoming = initial_num_input_filters
    blocks = []
    for _layer_num, bpl in enumerate(blocks_per_layer):
        downsample = False
        num_prev = num_incoming
        for b in range(bpl):
            if b == 0 and num_input != num_output and num_incoming != num_input:
                downsample = True
            blocks.append(_make_block_params(kg, num_prev, num_input, num_output,
                                             downsample, bottleneck))
            downsample = False
            num_prev = num_output
        num_incoming = num_output
        num_output *= 2
        num_input *= 2
    params['blocks'] = blocks

    fc_in = int(num_output / 2 * 1 ** 2)  # pooling_size == 1
    params['fc_w'] = 0.1 * jax.random.normal(kg(), (fc_in, num_classes), jnp.float32)
    params['fc_b'] = 0.1 * jax.random.normal(kg(), (num_classes,), jnp.float32)
    return params


# ----------------------------------------------------------------------------
# Forward pass (params kept as Python structure -> captured by closure for jit,
# so structural booleans / strides remain Python values, not tracers)
# ----------------------------------------------------------------------------
def resnet_block_forward(x, blk):
    identity = x
    if blk['bottleneck']:
        y = conv2d_bn(x, blk['conv1'], *blk['bn1'], stride=1, padding=0, relu=True)
        y = conv2d_bn(y, blk['conv2'], *blk['bn2'], stride=1, padding=1, relu=True)
    else:
        y = conv2d_bn(x, blk['conv1'], *blk['bn1'],
                      stride=blk['stride1'], padding=1, relu=True)
    if blk['downsample']:
        identity = conv2d_bn(identity, blk['ds_conv'], *blk['ds_bn'],
                             stride=blk['ds_stride'], padding=0, relu=False)
    # final conv of the block: BN, then residual add + ReLU, all fused in one kernel
    if blk['bottleneck']:
        y = conv2d_bn(y, blk['conv3'], *blk['bn3'], stride=1, padding=0,
                      relu=True, residual=identity)
    else:
        y = conv2d_bn(y, blk['conv2'], *blk['bn2'], stride=1, padding=1,
                      relu=True, residual=identity)
    return y


def resnet_forward(x_nhwc, params):
    # trunk: conv7x7 s2 p3 -> BN -> ReLU -> maxpool3x3 s2 p1
    x = conv2d_bn(x_nhwc, params['trunk_conv'], *params['trunk_bn'],
                  stride=2, padding=3, relu=True)
    x = maxpool2d(x, ksize=3, stride=2, padding=1)
    # residual layers
    for blk in params['blocks']:
        x = resnet_block_forward(x, blk)
    # adaptive avg pool (1,1) -> flatten -> Linear -> LogSoftmax (fused kernel)
    return head_pool_fc_logsoftmax(x, params['fc_w'], params['fc_b'])


# ----------------------------------------------------------------------------
# Demo
# ----------------------------------------------------------------------------
if __name__ == "__main__":
    key = jax.random.PRNGKey(0)
    k_in, k_par = jax.random.split(key)

    # Small config: ResNet(blocks_per_layer=[1, 1], num_classes=5, num_channels=4,
    #                      initial filters 8/8, bottleneck=False)
    blocks_per_layer = [1, 1]
    num_classes = 5
    num_channels = 4
    batch, spatial = 2, 16

    params = build_resnet_params(k_par, blocks_per_layer, num_classes, num_channels,
                                 initial_num_input_filters=8,
                                 initial_num_output_filters=8,
                                 bottleneck=False)

    # Reference PyTorch input would be NCHW (2, 4, 16, 16); kernel layout is NHWC.
    x_nchw = jax.random.normal(k_in, (batch, num_channels, spatial, spatial), jnp.float32)
    x_nhwc = jnp.transpose(x_nchw, (0, 2, 3, 1))

    # jit a closure so params' structural Python bools/ints stay static (no tracer bools)
    fwd = jax.jit(lambda inp: resnet_forward(inp, params))
    out = jax.block_until_ready(fwd(x_nhwc))

    assert out.shape == (batch, num_classes), out.shape
    # log-softmax rows must (approximately) exponentiate-sum to 1
    assert jnp.allclose(jnp.sum(jnp.exp(out), axis=1), 1.0, atol=1e-3)
    print("KERNEL_OK")
</pallas_src>

<mosaic_0001>
module attributes {stable_mosaic.version = 11 : i64} {
  func.func @kernel(%arg0: i32, %arg1: i32, %arg2: i32, %arg3: memref<64x256xbf16, #tpu.memory_space<vmem>>, %arg4: memref<256x128xbf16, #tpu.memory_space<vmem>>, %arg5: memref<1x128xf32, #tpu.memory_space<vmem>>, %arg6: memref<1x128xf32, #tpu.memory_space<vmem>>, %arg7: memref<64x128xbf16, #tpu.memory_space<vmem>>, %arg8: memref<64x128xf32, #tpu.memory_space<vmem>>) attributes {dimension_semantics = [#tpu.dimension_semantics<parallel>, #tpu.dimension_semantics<parallel>, #tpu.dimension_semantics<arbitrary>], iteration_bounds = array<i64: 2, 1, 1>, scalar_prefetch = 0 : i64, scratch_operands = 1 : i64, tpu.core_type = #tpu.core_type<tc>, window_params = [{transform_indices = @transform_0, window_bounds = array<i64: 64, 256>}, {transform_indices = @transform_1, window_bounds = array<i64: 256, 128>}, {transform_indices = @transform_2, window_bounds = array<i64: 1, 128>}, {transform_indices = @transform_3, window_bounds = array<i64: 1, 128>}, {transform_indices = @transform_4, window_bounds = array<i64: 64, 128>}]} {
    %c0_i32 = arith.constant 0 : i32
    %0 = arith.cmpi eq, %arg2, %c0_i32 : i32
    %1 = arith.extui %0 : i1 to i32
    %c0_i32_0 = arith.constant 0 : i32
    %2 = arith.cmpi ne, %1, %c0_i32_0 : i32
    scf.if %2 {
      %cst_10 = arith.constant 0.000000e+00 : f32
      %12 = vector.broadcast %cst_10 : f32 to vector<64x128xf32>
      %c0_11 = arith.constant 0 : index
      %c0_12 = arith.constant 0 : index
      %13 = vector.load %arg8[%c0_11, %c0_12] : memref<64x128xf32, #tpu.memory_space<vmem>>, vector<64x128xf32>
      tpu.vector_store %arg8[%c0_11, %c0_12], %12 {strides = array<i32>} : memref<64x128xf32, #tpu.memory_space<vmem>>, vector<64x128xf32>,
    } else {
    }
    %c0 = arith.constant 0 : index
    %c0_1 = arith.constant 0 : index
    %3 = vector.load %arg8[%c0, %c0_1] : memref<64x128xf32, #tpu.memory_space<vmem>>, vector<64x128xf32>
    %c0_2 = arith.constant 0 : index
    %c0_3 = arith.constant 0 : index
    %4 = vector.load %arg3[%c0_2, %c0_3] : memref<64x256xbf16, #tpu.memory_space<vmem>>, vector<64x256xbf16>
    %c0_4 = arith.constant 0 : index
    %c0_5 = arith.constant 0 : index
    %5 = vector.load %arg4[%c0_4, %c0_5] : memref<256x128xbf16, #tpu.memory_space<vmem>>, vector<256x128xbf16>
    %cst = arith.constant dense<0.000000e+00> : vector<64x128xf32>
    %6 = tpu.matmul %4, %5, %cst {dimension_numbers = #tpu.dot_dimension_numbers<[1], [0], [0], [1], [0, 0, 1, 1], [], []>} : vector<64x256xbf16>, vector<256x128xbf16>, vector<64x128xf32> -> vector<64x128xf32>
    %7 = arith.addf %3, %6 : vector<64x128xf32>
    %c0_6 = arith.constant 0 : index
    %c0_7 = arith.constant 0 : index
    %8 = vector.load %arg8[%c0_6, %c0_7] : memref<64x128xf32, #tpu.memory_space<vmem>>, vector<64x128xf32>
    tpu.vector_store %arg8[%c0_6, %c0_7], %7 {strides = array<i32>} : memref<64x128xf32, #tpu.memory_space<vmem>>, vector<64x128xf32>,
    %c0_i32_8 = arith.constant 0 : i32
    %9 = arith.cmpi eq, %arg2, %c0_i32_8 : i32
    %10 = arith.extui %9 : i1 to i32
    %c0_i32_9 = arith.constant 0 : i32
    %11 = arith.cmpi ne, %10, %c0_i32_9 : i32
    scf.if %11 {
      %c0_10 = arith.constant 0 : index
      %c0_11 = arith.constant 0 : index
      %12 = vector.load %arg8[%c0_10, %c0_11] : memref<64x128xf32, #tpu.memory_space<vmem>>, vector<64x128xf32>
      %c0_12 = arith.constant 0 : index
      %c0_13 = arith.constant 0 : index
      %13 = vector.load %arg5[%c0_12, %c0_13] : memref<1x128xf32, #tpu.memory_space<vmem>>, vector<1x128xf32>
      %14 = vector.broadcast %13 : vector<1x128xf32> to vector<64x128xf32>
      %15 = arith.mulf %12, %14 : vector<64x128xf32>
      %c0_14 = arith.constant 0 : index
      %c0_15 = arith.constant 0 : index
      %16 = vector.load %arg6[%c0_14, %c0_15] : memref<1x128xf32, #tpu.memory_space<vmem>>, vector<1x128xf32>
      %17 = vector.broadcast %16 : vector<1x128xf32> to vector<64x128xf32>
      %18 = arith.addf %15, %17 : vector<64x128xf32>
      %cst_16 = arith.constant 0.000000e+00 : f32
      %19 = vector.broadcast %cst_16 : f32 to vector<64x128xf32>
      %20 = arith.maximumf %18, %19 : vector<64x128xf32>
      %21 = arith.truncf %20 : vector<64x128xf32> to vector<64x128xbf16>
      %c0_17 = arith.constant 0 : index
      %c0_18 = arith.constant 0 : index
      %22 = vector.load %arg7[%c0_17, %c0_18] : memref<64x128xbf16, #tpu.memory_space<vmem>>, vector<64x128xbf16>
      tpu.vector_store %arg7[%c0_17, %c0_18], %21 {strides = array<i32>} : memref<64x128xbf16, #tpu.memory_space<vmem>>, vector<64x128xbf16>,
    } else {
    }
    return
  }
  func.func @transform_0(%arg0: i32, %arg1: i32, %arg2: i32) -> (i32, i32) {
    %c0_i32 = arith.constant 0 : i32
    return %arg0, %arg2 : i32, i32
  }
  func.func @transform_1(%arg0: i32, %arg1: i32, %arg2: i32) -> (i32, i32) {
    %c0_i32 = arith.constant 0 : i32
    return %arg2, %arg1 : i32, i32
  }
  func.func @transform_2(%arg0: i32, %arg1: i32, %arg2: i32) -> (i32, i32) {
    %c0_i32 = arith.constant 0 : i32
    %c0_i32_0 = arith.constant 0 : i32
    return %c0_i32, %arg1 : i32, i32
  }
  func.func @transform_3(%arg0: i32, %arg1: i32, %arg2: i32) -> (i32, i32) {
    %c0_i32 = arith.constant 0 : i32
    %c0_i32_0 = arith.constant 0 : i32
    return %c0_i32, %arg1 : i32, i32
  }
  func.func @transform_4(%arg0: i32, %arg1: i32, %arg2: i32) -> (i32, i32) {
    %c0_i32 = arith.constant 0 : i32
    return %arg0, %arg1 : i32, i32
  }
}

module attributes {stable_mosaic.version = 11 : i64} {
  func.func @kernel(%arg0: i32, %arg1: memref<1x4x5x40xbf16, #tpu.memory_space<vmem>>, %arg2: memref<1x4x32xbf16, #tpu.memory_space<vmem>>) attributes {dimension_semantics = [#tpu.dimension_semantics<parallel>], iteration_bounds = array<i64: 2>, scalar_prefetch = 0 : i64, scratch_operands = 0 : i64, tpu.core_type = #tpu.core_type<tc>, window_params = [{transform_indices = @transform_0, window_bounds = array<i64: 1, 4, 5, 40>}, {transform_indices = @transform_1, window_bounds = array<i64: 1, 4, 32>}]} {
    %c0 = arith.constant 0 : index
    %c0_0 = arith.constant 0 : index
    %c0_1 = arith.constant 0 : index
    %c0_2 = arith.constant 0 : index
    %0 = vector.load %arg1[%c0, %c0_0, %c0_1, %c0_2] : memref<1x4x5x40xbf16, #tpu.memory_space<vmem>>, vector<1x4x5x40xbf16>
    %1 = vector.shape_cast %0 : vector<1x4x5x40xbf16> to vector<4x5x40xbf16>
    %2 = vector.extract_strided_slice %1 {offsets = [0, 0, 0], sizes = [1, 5, 40], strides = [1, 1, 1]} : vector<4x5x40xbf16> to vector<1x5x40xbf16>
    %3 = vector.shape_cast %2 : vector<1x5x40xbf16> to vector<5x40xbf16>
    %4 = vector.extract_strided_slice %1 {offsets = [1, 0, 0], sizes = [1, 5, 40], strides = [1, 1, 1]} : vector<4x5x40xbf16> to vector<1x5x40xbf16>
    %5 = vector.shape_cast %4 : vector<1x5x40xbf16> to vector<5x40xbf16>
    %6 = vector.extract_strided_slice %1 {offsets = [2, 0, 0], sizes = [1, 5, 40], strides = [1, 1, 1]} : vector<4x5x40xbf16> to vector<1x5x40xbf16>
    %7 = vector.shape_cast %6 : vector<1x5x40xbf16> to vector<5x40xbf16>
    %8 = vector.extract_strided_slice %1 {offsets = [3, 0, 0], sizes = [1, 5, 40], strides = [1, 1, 1]} : vector<4x5x40xbf16> to vector<1x5x40xbf16>
    %9 = vector.shape_cast %8 : vector<1x5x40xbf16> to vector<5x40xbf16>
    %10 = vector.extract_strided_slice %3 {offsets = [0, 0], sizes = [4, 32], strides = [1, 1]} : vector<5x40xbf16> to vector<4x32xbf16>
    %11 = vector.extract_strided_slice %5 {offsets = [0, 0], sizes = [4, 32], strides = [1, 1]} : vector<5x40xbf16> to vector<4x32xbf16>
    %12 = arith.maximumf %10, %11 : vector<4x32xbf16>
    %13 = vector.extract_strided_slice %3 {offsets = [0, 8], sizes = [4, 32], strides = [1, 1]} : vector<5x40xbf16> to vector<4x32xbf16>
    %14 = arith.maximumf %12, %13 : vector<4x32xbf16>
    %15 = vector.extract_strided_slice %7 {offsets = [0, 0], sizes = [4, 32], strides = [1, 1]} : vector<5x40xbf16> to vector<4x32xbf16>
    %16 = arith.maximumf %14, %15 : vector<4x32xbf16>
    %17 = vector.extract_strided_slice %9 {offsets = [0, 0], sizes = [4, 32], strides = [1, 1]} : vector<5x40xbf16> to vector<4x32xbf16>
    %18 = arith.maximumf %16, %17 : vector<4x32xbf16>
    %19 = vector.extract_strided_slice %7 {offsets = [0, 8], sizes = [4, 32], strides = [1, 1]} : vector<5x40xbf16> to vector<4x32xbf16>
    %20 = arith.maximumf %18, %19 : vector<4x32xbf16>
    %21 = vector.extract_strided_slice %3 {offsets = [1, 0], sizes = [4, 32], strides = [1, 1]} : vector<5x40xbf16> to vector<4x32xbf16>
    %22 = arith.maximumf %20, %21 : vector<4x32xbf16>
    %23 = vector.extract_strided_slice %5 {offsets = [1, 0], sizes = [4, 32], strides = [1, 1]} : vector<5x40xbf16> to vector<4x32xbf16>
    %24 = arith.maximumf %22, %23 : vector<4x32xbf16>
    %25 = vector.extract_strided_slice %3 {offsets = [1, 8], sizes = [4, 32], strides = [1, 1]} : vector<5x40xbf16> to vector<4x32xbf16>
    %26 = arith.maximumf %24, %25 : vector<4x32xbf16>
    %c0_3 = arith.constant 0 : index
    %c0_4 = arith.constant 0 : index
    %c0_5 = arith.constant 0 : index
    %27 = vector.load %arg2[%c0_3, %c0_4, %c0_5] : memref<1x4x32xbf16, #tpu.memory_space<vmem>>, vector<1x4x32xbf16>
    %28 = vector.shape_cast %27 : vector<1x4x32xbf16> to vector<4x32xbf16>
    %29 = vector.shape_cast %26 : vector<4x32xbf16> to vector<1x4x32xbf16>
    tpu.vector_store %arg2[%c0_3, %c0_4, %c0_5], %29 {strides = array<i32>} : memref<1x4x32xbf16, #tpu.memory_space<vmem>>, vector<1x4x32xbf16>,
    return
  }
  func.func @transform_0(%arg0: i32) -> (i32, i32, i32, i32) {
    %c0_i32 = arith.constant 0 : i32
    %c0_i32_0 = arith.constant 0 : i32
    %c0_i32_1 = arith.constant 0 : i32
    %c0_i32_2 = arith.constant 0 : i32
    return %arg0, %c0_i32, %c0_i32_0, %c0_i32_1 : i32, i32, i32, i32
  }
  func.func @transform_1(%arg0: i32) -> (i32, i32, i32) {
    %c0_i32 = arith.constant 0 : i32
    %c0_i32_0 = arith.constant 0 : i32
    %c0_i32_1 = arith.constant 0 : i32
    return %arg0, %c0_i32, %c0_i32_0 : i32, i32, i32
  }
}

module attributes {stable_mosaic.version = 11 : i64} {
  func.func @kernel(%arg0: i32, %arg1: memref<1x6x48xbf16, #tpu.memory_space<vmem>>, %arg2: memref<3x48x32xbf16, #tpu.memory_space<vmem>>, %arg3: memref<1x32xf32, #tpu.memory_space<vmem>>, %arg4: memref<1x32xf32, #tpu.memory_space<vmem>>, %arg5: memref<1x4x32xbf16, #tpu.memory_space<vmem>>, %arg6: memref<1x4x32xbf16, #tpu.memory_space<vmem>>) attributes {dimension_semantics = [#tpu.dimension_semantics<parallel>], iteration_bounds = array<i64: 2>, scalar_prefetch = 0 : i64, scratch_operands = 0 : i64, tpu.core_type = #tpu.core_type<tc>, window_params = [{transform_indices = @transform_0, window_bounds = array<i64: 1, 6, 48>}, {pipeline_mode = #tpu.pipeline_mode<synchronous>, transform_indices = @transform_1, window_bounds = array<i64: 3, 48, 32>}, {pipeline_mode = #tpu.pipeline_mode<synchronous>, transform_indices = @transform_2, window_bounds = array<i64: 1, 32>}, {pipeline_mode = #tpu.pipeline_mode<synchronous>, transform_indices = @transform_3, window_bounds = array<i64: 1, 32>}, {transform_indices = @transform_4, window_bounds = array<i64: 1, 4, 32>}, {transform_indices = @transform_5, window_bounds = array<i64: 1, 4, 32>}]} {
    %c0 = arith.constant 0 : index
    %c0_0 = arith.constant 0 : index
    %c0_1 = arith.constant 0 : index
    %0 = vector.load %arg1[%c0, %c0_0, %c0_1] : memref<1x6x48xbf16, #tpu.memory_space<vmem>>, vector<1x6x48xbf16>
    %1 = vector.shape_cast %0 : vector<1x6x48xbf16> to vector<6x48xbf16>
    %2 = vector.extract_strided_slice %1 {offsets = [0, 0], sizes = [4, 48], strides = [1, 1]} : vector<6x48xbf16> to vector<4x48xbf16>
    %c0_2 = arith.constant 0 : index
    %c0_3 = arith.constant 0 : index
    %c0_4 = arith.constant 0 : index
    %3 = vector.load %arg2[%c0_2, %c0_3, %c0_4] : memref<3x48x32xbf16, #tpu.memory_space<vmem>>, vector<1x48x32xbf16>
    %4 = vector.shape_cast %3 : vector<1x48x32xbf16> to vector<48x32xbf16>
    %cst = arith.constant dense<0.000000e+00> : vector<4x32xf32>
    %5 = tpu.matmul %2, %4, %cst {dimension_numbers = #tpu.dot_dimension_numbers<[1], [0], [0], [1], [0, 0, 1, 1], [], []>} : vector<4x48xbf16>, vector<48x32xbf16>, vector<4x32xf32> -> vector<4x32xf32>
    %6 = vector.extract_strided_slice %1 {offsets = [1, 0], sizes = [4, 48], strides = [1, 1]} : vector<6x48xbf16> to vector<4x48xbf16>
    %c1 = arith.constant 1 : index
    %c0_5 = arith.constant 0 : index
    %c0_6 = arith.constant 0 : index
    %7 = vector.load %arg2[%c1, %c0_5, %c0_6] : memref<3x48x32xbf16, #tpu.memory_space<vmem>>, vector<1x48x32xbf16>
    %8 = vector.shape_cast %7 : vector<1x48x32xbf16> to vector<48x32xbf16>
    %cst_7 = arith.constant dense<0.000000e+00> : vector<4x32xf32>
    %9 = tpu.matmul %6, %8, %cst_7 {dimension_numbers = #tpu.dot_dimension_numbers<[1], [0], [0], [1], [0, 0, 1, 1], [], []>} : vector<4x48xbf16>, vector<48x32xbf16>, vector<4x32xf32> -> vector<4x32xf32>
    %10 = arith.addf %5, %9 : vector<4x32xf32>
    %11 = vector.extract_strided_slice %1 {offsets = [2, 0], sizes = [4, 48], strides = [1, 1]} : vector<6x48xbf16> to vector<4x48xbf16>
    %c2 = arith.constant 2 : index
    %c0_8 = arith.constant 0 : index
    %c0_9 = arith.constant 0 : index
    %12 = vector.load %arg2[%c2, %c0_8, %c0_9] : memref<3x48x32xbf16, #tpu.memory_space<vmem>>, vector<1x48x32xbf16>
    %13 = vector.shape_cast %12 : vector<1x48x32xbf16> to vector<48x32xbf16>
    %cst_10 = arith.constant dense<0.000000e+00> : vector<4x32xf32>
    %14 = tpu.matmul %11, %13, %cst_10 {dimension_numbers = #tpu.dot_dimension_numbers<[1], [0], [0], [1], [0, 0, 1, 1], [], []>} : vector<4x48xbf16>, vector<48x32xbf16>, vector<4x32xf32> -> vector<4x32xf32>
    %15 = arith.addf %10, %14 : vector<4x32xf32>
    %c0_11 = arith.constant 0 : index
    %c0_12 = arith.constant 0 : index
    %16 = vector.load %arg3[%c0_11, %c0_12] : memref<1x32xf32, #tpu.memory_space<vmem>>, vector<1x32xf32>
    %17 = vector.broadcast %16 : vector<1x32xf32> to vector<4x32xf32>
    %18 = arith.mulf %15, %17 : vector<4x32xf32>
    %c0_13 = arith.constant 0 : index
    %c0_14 = arith.constant 0 : index
    %19 = vector.load %arg4[%c0_13, %c0_14] : memref<1x32xf32, #tpu.memory_space<vmem>>, vector<1x32xf32>
    %20 = vector.broadcast %19 : vector<1x32xf32> to vector<4x32xf32>
    %21 = arith.addf %18, %20 : vector<4x32xf32>
    %c0_15 = arith.constant 0 : index
    %c0_16 = arith.constant 0 : index
    %c0_17 = arith.constant 0 : index
    %22 = vector.load %arg5[%c0_15, %c0_16, %c0_17] : memref<1x4x32xbf16, #tpu.memory_space<vmem>>, vector<1x4x32xbf16>
    %23 = vector.shape_cast %22 : vector<1x4x32xbf16> to vector<4x32xbf16>
    %24 = arith.extf %23 : vector<4x32xbf16> to vector<4x32xf32>
    %25 = arith.addf %21, %24 : vector<4x32xf32>
    %cst_18 = arith.constant 0.000000e+00 : f32
    %26 = vector.broadcast %cst_18 : f32 to vector<4x32xf32>
    %27 = arith.maximumf %25, %26 : vector<4x32xf32>
    %28 = arith.truncf %27 : vector<4x32xf32> to vector<4x32xbf16>
    %c0_19 = arith.constant 0 : index
    %c0_20 = arith.constant 0 : index
    %c0_21 = arith.constant 0 : index
    %29 = vector.load %arg6[%c0_19, %c0_20, %c0_21] : memref<1x4x32xbf16, #tpu.memory_space<vmem>>, vector<1x4x32xbf16>
    %30 = vector.shape_cast %29 : vector<1x4x32xbf16> to vector<4x32xbf16>
    %31 = vector.shape_cast %28 : vector<4x32xbf16> to vector<1x4x32xbf16>
    tpu.vector_store %arg6[%c0_19, %c0_20, %c0_21], %31 {strides = array<i32>} : memref<1x4x32xbf16, #tpu.memory_space<vmem>>, vector<1x4x32xbf16>,
    return
  }
  func.func @transform_0(%arg0: i32) -> (i32, i32, i32) {
    %c0_i32 = arith.constant 0 : i32
    %c0_i32_0 = arith.constant 0 : i32
    %c0_i32_1 = arith.constant 0 : i32
    return %arg0, %c0_i32, %c0_i32_0 : i32, i32, i32
  }
  func.func @transform_1(%arg0: i32) -> (i32, i32, i32) {
    %c0_i32 = arith.constant 0 : i32
    %c0_i32_0 = arith.constant 0 : i32
    %c0_i32_1 = arith.constant 0 : i32
    %c0_i32_2 = arith.constant 0 : i32
    return %c0_i32, %c0_i32_0, %c0_i32_1 : i32, i32, i32
  }
  func.func @transform_2(%arg0: i32) -> (i32, i32) {
    %c0_i32 = arith.constant 0 : i32
    %c0_i32_0 = arith.constant 0 : i32
    %c0_i32_1 = arith.constant 0 : i32
    return %c0_i32, %c0_i32_0 : i32, i32
  }
  func.func @transform_3(%arg0: i32) -> (i32, i32) {
    %c0_i32 = arith.constant 0 : i32
    %c0_i32_0 = arith.constant 0 : i32
    %c0_i32_1 = arith.constant 0 : i32
    return %c0_i32, %c0_i32_0 : i32, i32
  }
  func.func @transform_4(%arg0: i32) -> (i32, i32, i32) {
    %c0_i32 = arith.constant 0 : i32
    %c0_i32_0 = arith.constant 0 : i32
    %c0_i32_1 = arith.constant 0 : i32
    return %arg0, %c0_i32, %c0_i32_0 : i32, i32, i32
  }
  func.func @transform_5(%arg0: i32) -> (i32, i32, i32) {
    %c0_i32 = arith.constant 0 : i32
    %c0_i32_0 = arith.constant 0 : i32
    %c0_i32_1 = arith.constant 0 : i32
    return %arg0, %c0_i32, %c0_i32_0 : i32, i32, i32
  }
}

module attributes {stable_mosaic.version = 11 : i64} {
  func.func @kernel(%arg0: i32, %arg1: memref<1x6x48xbf16, #tpu.memory_space<vmem>>, %arg2: memref<3x48x32xbf16, #tpu.memory_space<vmem>>, %arg3: memref<1x32xf32, #tpu.memory_space<vmem>>, %arg4: memref<1x32xf32, #tpu.memory_space<vmem>>, %arg5: memref<1x4x32xbf16, #tpu.memory_space<vmem>>) attributes {dimension_semantics = [#tpu.dimension_semantics<parallel>], iteration_bounds = array<i64: 2>, scalar_prefetch = 0 : i64, scratch_operands = 0 : i64, tpu.core_type = #tpu.core_type<tc>, window_params = [{transform_indices = @transform_0, window_bounds = array<i64: 1, 6, 48>}, {pipeline_mode = #tpu.pipeline_mode<synchronous>, transform_indices = @transform_1, window_bounds = array<i64: 3, 48, 32>}, {pipeline_mode = #tpu.pipeline_mode<synchronous>, transform_indices = @transform_2, window_bounds = array<i64: 1, 32>}, {pipeline_mode = #tpu.pipeline_mode<synchronous>, transform_indices = @transform_3, window_bounds = array<i64: 1, 32>}, {transform_indices = @transform_4, window_bounds = array<i64: 1, 4, 32>}]} {
    %c0 = arith.constant 0 : index
    %c0_0 = arith.constant 0 : index
    %c0_1 = arith.constant 0 : index
    %0 = vector.load %arg1[%c0, %c0_0, %c0_1] : memref<1x6x48xbf16, #tpu.memory_space<vmem>>, vector<1x6x48xbf16>
    %1 = vector.shape_cast %0 : vector<1x6x48xbf16> to vector<6x48xbf16>
    %2 = vector.extract_strided_slice %1 {offsets = [0, 0], sizes = [4, 48], strides = [1, 1]} : vector<6x48xbf16> to vector<4x48xbf16>
    %c0_2 = arith.constant 0 : index
    %c0_3 = arith.constant 0 : index
    %c0_4 = arith.constant 0 : index
    %3 = vector.load %arg2[%c0_2, %c0_3, %c0_4] : memref<3x48x32xbf16, #tpu.memory_space<vmem>>, vector<1x48x32xbf16>
    %4 = vector.shape_cast %3 : vector<1x48x32xbf16> to vector<48x32xbf16>
    %cst = arith.constant dense<0.000000e+00> : vector<4x32xf32>
    %5 = tpu.matmul %2, %4, %cst {dimension_numbers = #tpu.dot_dimension_numbers<[1], [0], [0], [1], [0, 0, 1, 1], [], []>} : vector<4x48xbf16>, vector<48x32xbf16>, vector<4x32xf32> -> vector<4x32xf32>
    %6 = vector.extract_strided_slice %1 {offsets = [1, 0], sizes = [4, 48], strides = [1, 1]} : vector<6x48xbf16> to vector<4x48xbf16>
    %c1 = arith.constant 1 : index
    %c0_5 = arith.constant 0 : index
    %c0_6 = arith.constant 0 : index
    %7 = vector.load %arg2[%c1, %c0_5, %c0_6] : memref<3x48x32xbf16, #tpu.memory_space<vmem>>, vector<1x48x32xbf16>
    %8 = vector.shape_cast %7 : vector<1x48x32xbf16> to vector<48x32xbf16>
    %cst_7 = arith.constant dense<0.000000e+00> : vector<4x32xf32>
    %9 = tpu.matmul %6, %8, %cst_7 {dimension_numbers = #tpu.dot_dimension_numbers<[1], [0], [0], [1], [0, 0, 1, 1], [], []>} : vector<4x48xbf16>, vector<48x32xbf16>, vector<4x32xf32> -> vector<4x32xf32>
    %10 = arith.addf %5, %9 : vector<4x32xf32>
    %11 = vector.extract_strided_slice %1 {offsets = [2, 0], sizes = [4, 48], strides = [1, 1]} : vector<6x48xbf16> to vector<4x48xbf16>
    %c2 = arith.constant 2 : index
    %c0_8 = arith.constant 0 : index
    %c0_9 = arith.constant 0 : index
    %12 = vector.load %arg2[%c2, %c0_8, %c0_9] : memref<3x48x32xbf16, #tpu.memory_space<vmem>>, vector<1x48x32xbf16>
    %13 = vector.shape_cast %12 : vector<1x48x32xbf16> to vector<48x32xbf16>
    %cst_10 = arith.constant dense<0.000000e+00> : vector<4x32xf32>
    %14 = tpu.matmul %11, %13, %cst_10 {dimension_numbers = #tpu.dot_dimension_numbers<[1], [0], [0], [1], [0, 0, 1, 1], [], []>} : vector<4x48xbf16>, vector<48x32xbf16>, vector<4x32xf32> -> vector<4x32xf32>
    %15 = arith.addf %10, %14 : vector<4x32xf32>
    %c0_11 = arith.constant 0 : index
    %c0_12 = arith.constant 0 : index
    %16 = vector.load %arg3[%c0_11, %c0_12] : memref<1x32xf32, #tpu.memory_space<vmem>>, vector<1x32xf32>
    %17 = vector.broadcast %16 : vector<1x32xf32> to vector<4x32xf32>
    %18 = arith.mulf %15, %17 : vector<4x32xf32>
    %c0_13 = arith.constant 0 : index
    %c0_14 = arith.constant 0 : index
    %19 = vector.load %arg4[%c0_13, %c0_14] : memref<1x32xf32, #tpu.memory_space<vmem>>, vector<1x32xf32>
    %20 = vector.broadcast %19 : vector<1x32xf32> to vector<4x32xf32>
    %21 = arith.addf %18, %20 : vector<4x32xf32>
    %cst_15 = arith.constant 0.000000e+00 : f32
    %22 = vector.broadcast %cst_15 : f32 to vector<4x32xf32>
    %23 = arith.maximumf %21, %22 : vector<4x32xf32>
    %24 = arith.truncf %23 : vector<4x32xf32> to vector<4x32xbf16>
    %c0_16 = arith.constant 0 : index
    %c0_17 = arith.constant 0 : index
    %c0_18 = arith.constant 0 : index
    %25 = vector.load %arg5[%c0_16, %c0_17, %c0_18] : memref<1x4x32xbf16, #tpu.memory_space<vmem>>, vector<1x4x32xbf16>
    %26 = vector.shape_cast %25 : vector<1x4x32xbf16> to vector<4x32xbf16>
    %27 = vector.shape_cast %24 : vector<4x32xbf16> to vector<1x4x32xbf16>
    tpu.vector_store %arg5[%c0_16, %c0_17, %c0_18], %27 {strides = array<i32>} : memref<1x4x32xbf16, #tpu.memory_space<vmem>>, vector<1x4x32xbf16>,
    return
  }
  func.func @transform_0(%arg0: i32) -> (i32, i32, i32) {
    %c0_i32 = arith.constant 0 : i32
    %c0_i32_0 = arith.constant 0 : i32
    %c0_i32_1 = arith.constant 0 : i32
    return %arg0, %c0_i32, %c0_i32_0 : i32, i32, i32
  }
  func.func @transform_1(%arg0: i32) -> (i32, i32, i32) {
    %c0_i32 = arith.constant 0 : i32
    %c0_i32_0 = arith.constant 0 : i32
    %c0_i32_1 = arith.constant 0 : i32
    %c0_i32_2 = arith.constant 0 : i32
    return %c0_i32, %c0_i32_0, %c0_i32_1 : i32, i32, i32
  }
  func.func @transform_2(%arg0: i32) -> (i32, i32) {
    %c0_i32 = arith.constant 0 : i32
    %c0_i32_0 = arith.constant 0 : i32
    %c0_i32_1 = arith.constant 0 : i32
    return %c0_i32, %c0_i32_0 : i32, i32
  }
  func.func @transform_3(%arg0: i32) -> (i32, i32) {
    %c0_i32 = arith.constant 0 : i32
    %c0_i32_0 = arith.constant 0 : i32
    %c0_i32_1 = arith.constant 0 : i32
    return %c0_i32, %c0_i32_0 : i32, i32
  }
  func.func @transform_4(%arg0: i32) -> (i32, i32, i32) {
    %c0_i32 = arith.constant 0 : i32
    %c0_i32_0 = arith.constant 0 : i32
    %c0_i32_1 = arith.constant 0 : i32
    return %arg0, %c0_i32, %c0_i32_0 : i32, i32, i32
  }
}

module attributes {stable_mosaic.version = 11 : i64} {
  func.func @kernel(%arg0: i32, %arg1: i32, %arg2: i32, %arg3: memref<16x128xbf16, #tpu.memory_space<vmem>>, %arg4: memref<128x128xbf16, #tpu.memory_space<vmem>>, %arg5: memref<1x128xf32, #tpu.memory_space<vmem>>, %arg6: memref<1x128xf32, #tpu.memory_space<vmem>>, %arg7: memref<16x128xbf16, #tpu.memory_space<vmem>>, %arg8: memref<16x128xf32, #tpu.memory_space<vmem>>) attributes {dimension_semantics = [#tpu.dimension_semantics<parallel>, #tpu.dimension_semantics<parallel>, #tpu.dimension_semantics<arbitrary>], iteration_bounds = array<i64: 2, 1, 1>, scalar_prefetch = 0 : i64, scratch_operands = 1 : i64, tpu.core_type = #tpu.core_type<tc>, window_params = [{transform_indices = @transform_0, window_bounds = array<i64: 16, 128>}, {transform_indices = @transform_1, window_bounds = array<i64: 128, 128>}, {transform_indices = @transform_2, window_bounds = array<i64: 1, 128>}, {transform_indices = @transform_3, window_bounds = array<i64: 1, 128>}, {transform_indices = @transform_4, window_bounds = array<i64: 16, 128>}]} {
    %c0_i32 = arith.constant 0 : i32
    %0 = arith.cmpi eq, %arg2, %c0_i32 : i32
    %1 = arith.extui %0 : i1 to i32
    %c0_i32_0 = arith.constant 0 : i32
    %2 = arith.cmpi ne, %1, %c0_i32_0 : i32
    scf.if %2 {
      %cst_10 = arith.constant 0.000000e+00 : f32
      %12 = vector.broadcast %cst_10 : f32 to vector<16x128xf32>
      %c0_11 = arith.constant 0 : index
      %c0_12 = arith.constant 0 : index
      %13 = vector.load %arg8[%c0_11, %c0_12] : memref<16x128xf32, #tpu.memory_space<vmem>>, vector<16x128xf32>
      tpu.vector_store %arg8[%c0_11, %c0_12], %12 {strides = array<i32>} : memref<16x128xf32, #tpu.memory_space<vmem>>, vector<16x128xf32>,
    } else {
    }
    %c0 = arith.constant 0 : index
    %c0_1 = arith.constant 0 : index
    %3 = vector.load %arg8[%c0, %c0_1] : memref<16x128xf32, #tpu.memory_space<vmem>>, vector<16x128xf32>
    %c0_2 = arith.constant 0 : index
    %c0_3 = arith.constant 0 : index
    %4 = vector.load %arg3[%c0_2, %c0_3] : memref<16x128xbf16, #tpu.memory_space<vmem>>, vector<16x128xbf16>
    %c0_4 = arith.constant 0 : index
    %c0_5 = arith.constant 0 : index
    %5 = vector.load %arg4[%c0_4, %c0_5] : memref<128x128xbf16, #tpu.memory_space<vmem>>, vector<128x128xbf16>
    %cst = arith.constant dense<0.000000e+00> : vector<16x128xf32>
    %6 = tpu.matmul %4, %5, %cst {dimension_numbers = #tpu.dot_dimension_numbers<[1], [0], [0], [1], [0, 0, 1, 1], [], []>} : vector<16x128xbf16>, vector<128x128xbf16>, vector<16x128xf32> -> vector<16x128xf32>
    %7 = arith.addf %3, %6 : vector<16x128xf32>
    %c0_6 = arith.constant 0 : index
    %c0_7 = arith.constant 0 : index
    %8 = vector.load %arg8[%c0_6, %c0_7] : memref<16x128xf32, #tpu.memory_space<vmem>>, vector<16x128xf32>
    tpu.vector_store %arg8[%c0_6, %c0_7], %7 {strides = array<i32>} : memref<16x128xf32, #tpu.memory_space<vmem>>, vector<16x128xf32>,
    %c0_i32_8 = arith.constant 0 : i32
    %9 = arith.cmpi eq, %arg2, %c0_i32_8 : i32
    %10 = arith.extui %9 : i1 to i32
    %c0_i32_9 = arith.constant 0 : i32
    %11 = arith.cmpi ne, %10, %c0_i32_9 : i32
    scf.if %11 {
      %c0_10 = arith.constant 0 : index
      %c0_11 = arith.constant 0 : index
      %12 = vector.load %arg8[%c0_10, %c0_11] : memref<16x128xf32, #tpu.memory_space<vmem>>, vector<16x128xf32>
      %c0_12 = arith.constant 0 : index
      %c0_13 = arith.constant 0 : index
      %13 = vector.load %arg5[%c0_12, %c0_13] : memref<1x128xf32, #tpu.memory_space<vmem>>, vector<1x128xf32>
      %14 = vector.broadcast %13 : vector<1x128xf32> to vector<16x128xf32>
      %15 = arith.mulf %12, %14 : vector<16x128xf32>
      %c0_14 = arith.constant 0 : index
      %c0_15 = arith.constant 0 : index
      %16 = vector.load %arg6[%c0_14, %c0_15] : memref<1x128xf32, #tpu.memory_space<vmem>>, vector<1x128xf32>
      %17 = vector.broadcast %16 : vector<1x128xf32> to vector<16x128xf32>
      %18 = arith.addf %15, %17 : vector<16x128xf32>
      %19 = arith.truncf %18 : vector<16x128xf32> to vector<16x128xbf16>
      %c0_16 = arith.constant 0 : index
      %c0_17 = arith.constant 0 : index
      %20 = vector.load %arg7[%c0_16, %c0_17] : memref<16x128xbf16, #tpu.memory_space<vmem>>, vector<16x128xbf16>
      tpu.vector_store %arg7[%c0_16, %c0_17], %19 {strides = array<i32>} : memref<16x128xbf16, #tpu.memory_space<vmem>>, vector<16x128xbf16>,
    } else {
    }
    return
  }
  func.func @transform_0(%arg0: i32, %arg1: i32, %arg2: i32) -> (i32, i32) {
    %c0_i32 = arith.constant 0 : i32
    return %arg0, %arg2 : i32, i32
  }
  func.func @transform_1(%arg0: i32, %arg1: i32, %arg2: i32) -> (i32, i32) {
    %c0_i32 = arith.constant 0 : i32
    return %arg2, %arg1 : i32, i32
  }
  func.func @transform_2(%arg0: i32, %arg1: i32, %arg2: i32) -> (i32, i32) {
    %c0_i32 = arith.constant 0 : i32
    %c0_i32_0 = arith.constant 0 : i32
    return %c0_i32, %arg1 : i32, i32
  }
  func.func @transform_3(%arg0: i32, %arg1: i32, %arg2: i32) -> (i32, i32) {
    %c0_i32 = arith.constant 0 : i32
    %c0_i32_0 = arith.constant 0 : i32
    return %c0_i32, %arg1 : i32, i32
  }
  func.func @transform_4(%arg0: i32, %arg1: i32, %arg2: i32) -> (i32, i32) {
    %c0_i32 = arith.constant 0 : i32
    return %arg0, %arg1 : i32, i32
  }
}

module attributes {stable_mosaic.version = 11 : i64} {
  func.func @kernel(%arg0: i32, %arg1: memref<1x6x48xbf16, #tpu.memory_space<vmem>>, %arg2: memref<3x48x64xbf16, #tpu.memory_space<vmem>>, %arg3: memref<1x64xf32, #tpu.memory_space<vmem>>, %arg4: memref<1x64xf32, #tpu.memory_space<vmem>>, %arg5: memref<1x4x64xbf16, #tpu.memory_space<vmem>>) attributes {dimension_semantics = [#tpu.dimension_semantics<parallel>], iteration_bounds = array<i64: 2>, scalar_prefetch = 0 : i64, scratch_operands = 0 : i64, tpu.core_type = #tpu.core_type<tc>, window_params = [{transform_indices = @transform_0, window_bounds = array<i64: 1, 6, 48>}, {pipeline_mode = #tpu.pipeline_mode<synchronous>, transform_indices = @transform_1, window_bounds = array<i64: 3, 48, 64>}, {pipeline_mode = #tpu.pipeline_mode<synchronous>, transform_indices = @transform_2, window_bounds = array<i64: 1, 64>}, {pipeline_mode = #tpu.pipeline_mode<synchronous>, transform_indices = @transform_3, window_bounds = array<i64: 1, 64>}, {transform_indices = @transform_4, window_bounds = array<i64: 1, 4, 64>}]} {
    %c0 = arith.constant 0 : index
    %c0_0 = arith.constant 0 : index
    %c0_1 = arith.constant 0 : index
    %0 = vector.load %arg1[%c0, %c0_0, %c0_1] : memref<1x6x48xbf16, #tpu.memory_space<vmem>>, vector<1x6x48xbf16>
    %1 = vector.shape_cast %0 : vector<1x6x48xbf16> to vector<6x48xbf16>
    %2 = vector.extract_strided_slice %1 {offsets = [0, 0], sizes = [4, 48], strides = [1, 1]} : vector<6x48xbf16> to vector<4x48xbf16>
    %c0_2 = arith.constant 0 : index
    %c0_3 = arith.constant 0 : index
    %c0_4 = arith.constant 0 : index
    %3 = vector.load %arg2[%c0_2, %c0_3, %c0_4] : memref<3x48x64xbf16, #tpu.memory_space<vmem>>, vector<1x48x64xbf16>
    %4 = vector.shape_cast %3 : vector<1x48x64xbf16> to vector<48x64xbf16>
    %cst = arith.constant dense<0.000000e+00> : vector<4x64xf32>
    %5 = tpu.matmul %2, %4, %cst {dimension_numbers = #tpu.dot_dimension_numbers<[1], [0], [0], [1], [0, 0, 1, 1], [], []>} : vector<4x48xbf16>, vector<48x64xbf16>, vector<4x64xf32> -> vector<4x64xf32>
    %6 = vector.extract_strided_slice %1 {offsets = [1, 0], sizes = [4, 48], strides = [1, 1]} : vector<6x48xbf16> to vector<4x48xbf16>
    %c1 = arith.constant 1 : index
    %c0_5 = arith.constant 0 : index
    %c0_6 = arith.constant 0 : index
    %7 = vector.load %arg2[%c1, %c0_5, %c0_6] : memref<3x48x64xbf16, #tpu.memory_space<vmem>>, vector<1x48x64xbf16>
    %8 = vector.shape_cast %7 : vector<1x48x64xbf16> to vector<48x64xbf16>
    %cst_7 = arith.constant dense<0.000000e+00> : vector<4x64xf32>
    %9 = tpu.matmul %6, %8, %cst_7 {dimension_numbers = #tpu.dot_dimension_numbers<[1], [0], [0], [1], [0, 0, 1, 1], [], []>} : vector<4x48xbf16>, vector<48x64xbf16>, vector<4x64xf32> -> vector<4x64xf32>
    %10 = arith.addf %5, %9 : vector<4x64xf32>
    %11 = vector.extract_strided_slice %1 {offsets = [2, 0], sizes = [4, 48], strides = [1, 1]} : vector<6x48xbf16> to vector<4x48xbf16>
    %c2 = arith.constant 2 : index
    %c0_8 = arith.constant 0 : index
    %c0_9 = arith.constant 0 : index
    %12 = vector.load %arg2[%c2, %c0_8, %c0_9] : memref<3x48x64xbf16, #tpu.memory_space<vmem>>, vector<1x48x64xbf16>
    %13 = vector.shape_cast %12 : vector<1x48x64xbf16> to vector<48x64xbf16>
    %cst_10 = arith.constant dense<0.000000e+00> : vector<4x64xf32>
    %14 = tpu.matmul %11, %13, %cst_10 {dimension_numbers = #tpu.dot_dimension_numbers<[1], [0], [0], [1], [0, 0, 1, 1], [], []>} : vector<4x48xbf16>, vector<48x64xbf16>, vector<4x64xf32> -> vector<4x64xf32>
    %15 = arith.addf %10, %14 : vector<4x64xf32>
    %c0_11 = arith.constant 0 : index
    %c0_12 = arith.constant 0 : index
    %16 = vector.load %arg3[%c0_11, %c0_12] : memref<1x64xf32, #tpu.memory_space<vmem>>, vector<1x64xf32>
    %17 = vector.broadcast %16 : vector<1x64xf32> to vector<4x64xf32>
    %18 = arith.mulf %15, %17 : vector<4x64xf32>
    %c0_13 = arith.constant 0 : index
    %c0_14 = arith.constant 0 : index
    %19 = vector.load %arg4[%c0_13, %c0_14] : memref<1x64xf32, #tpu.memory_space<vmem>>, vector<1x64xf32>
    %20 = vector.broadcast %19 : vector<1x64xf32> to vector<4x64xf32>
    %21 = arith.addf %18, %20 : vector<4x64xf32>
    %cst_15 = arith.constant 0.000000e+00 : f32
    %22 = vector.broadcast %cst_15 : f32 to vector<4x64xf32>
    %23 = arith.maximumf %21, %22 : vector<4x64xf32>
    %24 = arith.truncf %23 : vector<4x64xf32> to vector<4x64xbf16>
    %c0_16 = arith.constant 0 : index
    %c0_17 = arith.constant 0 : index
    %c0_18 = arith.constant 0 : index
    %25 = vector.load %arg5[%c0_16, %c0_17, %c0_18] : memref<1x4x64xbf16, #tpu.memory_space<vmem>>, vector<1x4x64xbf16>
    %26 = vector.shape_cast %25 : vector<1x4x64xbf16> to vector<4x64xbf16>
    %27 = vector.shape_cast %24 : vector<4x64xbf16> to vector<1x4x64xbf16>
    tpu.vector_store %arg5[%c0_16, %c0_17, %c0_18], %27 {strides = array<i32>} : memref<1x4x64xbf16, #tpu.memory_space<vmem>>, vector<1x4x64xbf16>,
    return
  }
  func.func @transform_0(%arg0: i32) -> (i32, i32, i32) {
    %c0_i32 = arith.constant 0 : i32
    %c0_i32_0 = arith.constant 0 : i32
    %c0_i32_1 = arith.constant 0 : i32
    return %arg0, %c0_i32, %c0_i32_0 : i32, i32, i32
  }
  func.func @transform_1(%arg0: i32) -> (i32, i32, i32) {
    %c0_i32 = arith.constant 0 : i32
    %c0_i32_0 = arith.constant 0 : i32
    %c0_i32_1 = arith.constant 0 : i32
    %c0_i32_2 = arith.constant 0 : i32
    return %c0_i32, %c0_i32_0, %c0_i32_1 : i32, i32, i32
  }
  func.func @transform_2(%arg0: i32) -> (i32, i32) {
    %c0_i32 = arith.constant 0 : i32
    %c0_i32_0 = arith.constant 0 : i32
    %c0_i32_1 = arith.constant 0 : i32
    return %c0_i32, %c0_i32_0 : i32, i32
  }
  func.func @transform_3(%arg0: i32) -> (i32, i32) {
    %c0_i32 = arith.constant 0 : i32
    %c0_i32_0 = arith.constant 0 : i32
    %c0_i32_1 = arith.constant 0 : i32
    return %c0_i32, %c0_i32_0 : i32, i32
  }
  func.func @transform_4(%arg0: i32) -> (i32, i32, i32) {
    %c0_i32 = arith.constant 0 : i32
    %c0_i32_0 = arith.constant 0 : i32
    %c0_i32_1 = arith.constant 0 : i32
    return %arg0, %c0_i32, %c0_i32_0 : i32, i32, i32
  }
}

module attributes {stable_mosaic.version = 11 : i64} {
  func.func @kernel(%arg0: i32, %arg1: memref<1x6x96xbf16, #tpu.memory_space<vmem>>, %arg2: memref<3x96x64xbf16, #tpu.memory_space<vmem>>, %arg3: memref<1x64xf32, #tpu.memory_space<vmem>>, %arg4: memref<1x64xf32, #tpu.memory_space<vmem>>, %arg5: memref<1x4x64xbf16, #tpu.memory_space<vmem>>, %arg6: memref<1x4x64xbf16, #tpu.memory_space<vmem>>) attributes {dimension_semantics = [#tpu.dimension_semantics<parallel>], iteration_bounds = array<i64: 2>, scalar_prefetch = 0 : i64, scratch_operands = 0 : i64, tpu.core_type = #tpu.core_type<tc>, window_params = [{transform_indices = @transform_0, window_bounds = array<i64: 1, 6, 96>}, {pipeline_mode = #tpu.pipeline_mode<synchronous>, transform_indices = @transform_1, window_bounds = array<i64: 3, 96, 64>}, {pipeline_mode = #tpu.pipeline_mode<synchronous>, transform_indices = @transform_2, window_bounds = array<i64: 1, 64>}, {pipeline_mode = #tpu.pipeline_mode<synchronous>, transform_indices = @transform_3, window_bounds = array<i64: 1, 64>}, {transform_indices = @transform_4, window_bounds = array<i64: 1, 4, 64>}, {transform_indices = @transform_5, window_bounds = array<i64: 1, 4, 64>}]} {
    %c0 = arith.constant 0 : index
    %c0_0 = arith.constant 0 : index
    %c0_1 = arith.constant 0 : index
    %0 = vector.load %arg1[%c0, %c0_0, %c0_1] : memref<1x6x96xbf16, #tpu.memory_space<vmem>>, vector<1x6x96xbf16>
    %1 = vector.shape_cast %0 : vector<1x6x96xbf16> to vector<6x96xbf16>
    %2 = vector.extract_strided_slice %1 {offsets = [0, 0], sizes = [4, 96], strides = [1, 1]} : vector<6x96xbf16> to vector<4x96xbf16>
    %c0_2 = arith.constant 0 : index
    %c0_3 = arith.constant 0 : index
    %c0_4 = arith.constant 0 : index
    %3 = vector.load %arg2[%c0_2, %c0_3, %c0_4] : memref<3x96x64xbf16, #tpu.memory_space<vmem>>, vector<1x96x64xbf16>
    %4 = vector.shape_cast %3 : vector<1x96x64xbf16> to vector<96x64xbf16>
    %cst = arith.constant dense<0.000000e+00> : vector<4x64xf32>
    %5 = tpu.matmul %2, %4, %cst {dimension_numbers = #tpu.dot_dimension_numbers<[1], [0], [0], [1], [0, 0, 1, 1], [], []>} : vector<4x96xbf16>, vector<96x64xbf16>, vector<4x64xf32> -> vector<4x64xf32>
    %6 = vector.extract_strided_slice %1 {offsets = [1, 0], sizes = [4, 96], strides = [1, 1]} : vector<6x96xbf16> to vector<4x96xbf16>
    %c1 = arith.constant 1 : index
    %c0_5 = arith.constant 0 : index
    %c0_6 = arith.constant 0 : index
    %7 = vector.load %arg2[%c1, %c0_5, %c0_6] : memref<3x96x64xbf16, #tpu.memory_space<vmem>>, vector<1x96x64xbf16>
    %8 = vector.shape_cast %7 : vector<1x96x64xbf16> to vector<96x64xbf16>
    %cst_7 = arith.constant dense<0.000000e+00> : vector<4x64xf32>
    %9 = tpu.matmul %6, %8, %cst_7 {dimension_numbers = #tpu.dot_dimension_numbers<[1], [0], [0], [1], [0, 0, 1, 1], [], []>} : vector<4x96xbf16>, vector<96x64xbf16>, vector<4x64xf32> -> vector<4x64xf32>
    %10 = arith.addf %5, %9 : vector<4x64xf32>
    %11 = vector.extract_strided_slice %1 {offsets = [2, 0], sizes = [4, 96], strides = [1, 1]} : vector<6x96xbf16> to vector<4x96xbf16>
    %c2 = arith.constant 2 : index
    %c0_8 = arith.constant 0 : index
    %c0_9 = arith.constant 0 : index
    %12 = vector.load %arg2[%c2, %c0_8, %c0_9] : memref<3x96x64xbf16, #tpu.memory_space<vmem>>, vector<1x96x64xbf16>
    %13 = vector.shape_cast %12 : vector<1x96x64xbf16> to vector<96x64xbf16>
    %cst_10 = arith.constant dense<0.000000e+00> : vector<4x64xf32>
    %14 = tpu.matmul %11, %13, %cst_10 {dimension_numbers = #tpu.dot_dimension_numbers<[1], [0], [0], [1], [0, 0, 1, 1], [], []>} : vector<4x96xbf16>, vector<96x64xbf16>, vector<4x64xf32> -> vector<4x64xf32>
    %15 = arith.addf %10, %14 : vector<4x64xf32>
    %c0_11 = arith.constant 0 : index
    %c0_12 = arith.constant 0 : index
    %16 = vector.load %arg3[%c0_11, %c0_12] : memref<1x64xf32, #tpu.memory_space<vmem>>, vector<1x64xf32>
    %17 = vector.broadcast %16 : vector<1x64xf32> to vector<4x64xf32>
    %18 = arith.mulf %15, %17 : vector<4x64xf32>
    %c0_13 = arith.constant 0 : index
    %c0_14 = arith.constant 0 : index
    %19 = vector.load %arg4[%c0_13, %c0_14] : memref<1x64xf32, #tpu.memory_space<vmem>>, vector<1x64xf32>
    %20 = vector.broadcast %19 : vector<1x64xf32> to vector<4x64xf32>
    %21 = arith.addf %18, %20 : vector<4x64xf32>
    %c0_15 = arith.constant 0 : index
    %c0_16 = arith.constant 0 : index
    %c0_17 = arith.constant 0 : index
    %22 = vector.load %arg5[%c0_15, %c0_16, %c0_17] : memref<1x4x64xbf16, #tpu.memory_space<vmem>>, vector<1x4x64xbf16>
    %23 = vector.shape_cast %22 : vector<1x4x64xbf16> to vector<4x64xbf16>
    %24 = arith.extf %23 : vector<4x64xbf16> to vector<4x64xf32>
    %25 = arith.addf %21, %24 : vector<4x64xf32>
    %cst_18 = arith.constant 0.000000e+00 : f32
    %26 = vector.broadcast %cst_18 : f32 to vector<4x64xf32>
    %27 = arith.maximumf %25, %26 : vector<4x64xf32>
    %28 = arith.truncf %27 : vector<4x64xf32> to vector<4x64xbf16>
    %c0_19 = arith.constant 0 : index
    %c0_20 = arith.constant 0 : index
    %c0_21 = arith.constant 0 : index
    %29 = vector.load %arg6[%c0_19, %c0_20, %c0_21] : memref<1x4x64xbf16, #tpu.memory_space<vmem>>, vector<1x4x64xbf16>
    %30 = vector.shape_cast %29 : vector<1x4x64xbf16> to vector<4x64xbf16>
    %31 = vector.shape_cast %28 : vector<4x64xbf16> to vector<1x4x64xbf16>
    tpu.vector_store %arg6[%c0_19, %c0_20, %c0_21], %31 {strides = array<i32>} : memref<1x4x64xbf16, #tpu.memory_space<vmem>>, vector<1x4x64xbf16>,
    return
  }
  func.func @transform_0(%arg0: i32) -> (i32, i32, i32) {
    %c0_i32 = arith.constant 0 : i32
    %c0_i32_0 = arith.constant 0 : i32
    %c0_i32_1 = arith.constant 0 : i32
    return %arg0, %c0_i32, %c0_i32_0 : i32, i32, i32
  }
  func.func @transform_1(%arg0: i32) -> (i32, i32, i32) {
    %c0_i32 = arith.constant 0 : i32
    %c0_i32_0 = arith.constant 0 : i32
    %c0_i32_1 = arith.constant 0 : i32
    %c0_i32_2 = arith.constant 0 : i32
    return %c0_i32, %c0_i32_0, %c0_i32_1 : i32, i32, i32
  }
  func.func @transform_2(%arg0: i32) -> (i32, i32) {
    %c0_i32 = arith.constant 0 : i32
    %c0_i32_0 = arith.constant 0 : i32
    %c0_i32_1 = arith.constant 0 : i32
    return %c0_i32, %c0_i32_0 : i32, i32
  }
  func.func @transform_3(%arg0: i32) -> (i32, i32) {
    %c0_i32 = arith.constant 0 : i32
    %c0_i32_0 = arith.constant 0 : i32
    %c0_i32_1 = arith.constant 0 : i32
    return %c0_i32, %c0_i32_0 : i32, i32
  }
  func.func @transform_4(%arg0: i32) -> (i32, i32, i32) {
    %c0_i32 = arith.constant 0 : i32
    %c0_i32_0 = arith.constant 0 : i32
    %c0_i32_1 = arith.constant 0 : i32
    return %arg0, %c0_i32, %c0_i32_0 : i32, i32, i32
  }
  func.func @transform_5(%arg0: i32) -> (i32, i32, i32) {
    %c0_i32 = arith.constant 0 : i32
    %c0_i32_0 = arith.constant 0 : i32
    %c0_i32_1 = arith.constant 0 : i32
    return %arg0, %c0_i32, %c0_i32_0 : i32, i32, i32
  }
}

module attributes {stable_mosaic.version = 11 : i64} {
  func.func @_head_kernel(%arg0: i32, %arg1: memref<2x16x16xbf16, #tpu.memory_space<vmem>>, %arg2: memref<16x5xbf16, #tpu.memory_space<vmem>>, %arg3: memref<1x5xf32, #tpu.memory_space<vmem>>, %arg4: memref<2x5xf32, #tpu.memory_space<vmem>>) attributes {dimension_semantics = [#tpu.dimension_semantics<arbitrary>], iteration_bounds = array<i64: 1>, scalar_prefetch = 0 : i64, scratch_operands = 0 : i64, tpu.core_type = #tpu.core_type<tc>, window_params = [{pipeline_mode = #tpu.pipeline_mode<synchronous>, transform_indices = @transform_0, window_bounds = array<i64: 2, 16, 16>}, {pipeline_mode = #tpu.pipeline_mode<synchronous>, transform_indices = @transform_1, window_bounds = array<i64: 16, 5>}, {pipeline_mode = #tpu.pipeline_mode<synchronous>, transform_indices = @transform_2, window_bounds = array<i64: 1, 5>}, {pipeline_mode = #tpu.pipeline_mode<synchronous>, transform_indices = @transform_3, window_bounds = array<i64: 2, 5>}]} {
    %c0 = arith.constant 0 : index
    %c0_0 = arith.constant 0 : index
    %c0_1 = arith.constant 0 : index
    %0 = vector.load %arg1[%c0, %c0_0, %c0_1] : memref<2x16x16xbf16, #tpu.memory_space<vmem>>, vector<2x16x16xbf16>
    %1 = arith.extf %0 : vector<2x16x16xbf16> to vector<2x16x16xf32>
    %cst = arith.constant dense<0.000000e+00> : vector<2x16xf32>
    %2 = vector.multi_reduction <add>, %1, %cst [1] : vector<2x16x16xf32> to vector<2x16xf32>
    %cst_2 = arith.constant 1.600000e+01 : f32
    %3 = vector.broadcast %cst_2 : f32 to vector<2x16xf32>
    %4 = arith.divf %2, %3 : vector<2x16xf32>
    %5 = arith.truncf %4 : vector<2x16xf32> to vector<2x16xbf16>
    %c0_3 = arith.constant 0 : index
    %c0_4 = arith.constant 0 : index
    %6 = vector.load %arg2[%c0_3, %c0_4] : memref<16x5xbf16, #tpu.memory_space<vmem>>, vector<16x5xbf16>
    %cst_5 = arith.constant dense<0.000000e+00> : vector<2x5xf32>
    %7 = tpu.matmul %5, %6, %cst_5 {dimension_numbers = #tpu.dot_dimension_numbers<[1], [0], [0], [1], [0, 0, 1, 1], [], []>} : vector<2x16xbf16>, vector<16x5xbf16>, vector<2x5xf32> -> vector<2x5xf32>
    %c0_6 = arith.constant 0 : index
    %c0_7 = arith.constant 0 : index
    %8 = vector.load %arg3[%c0_6, %c0_7] : memref<1x5xf32, #tpu.memory_space<vmem>>, vector<1x5xf32>
    %9 = vector.broadcast %8 : vector<1x5xf32> to vector<2x5xf32>
    %10 = arith.addf %7, %9 : vector<2x5xf32>
    %cst_8 = arith.constant dense<0xFF800000> : vector<2xf32>
    %11 = vector.multi_reduction <maximumf>, %10, %cst_8 [1] : vector<2x5xf32> to vector<2xf32>
    %12 = vector.shape_cast %11 : vector<2xf32> to vector<2x1xf32>
    %13 = vector.broadcast %12 : vector<2x1xf32> to vector<2x5xf32>
    %14 = arith.subf %10, %13 : vector<2x5xf32>
    %15 = math.exp %14 : vector<2x5xf32>
    %cst_9 = arith.constant dense<0.000000e+00> : vector<2xf32>
    %16 = vector.multi_reduction <add>, %15, %cst_9 [1] : vector<2x5xf32> to vector<2xf32>
    %17 = vector.shape_cast %16 : vector<2xf32> to vector<2x1xf32>
    %18 = math.log %17 : vector<2x1xf32>
    %19 = vector.broadcast %18 : vector<2x1xf32> to vector<2x5xf32>
    %20 = arith.subf %14, %19 : vector<2x5xf32>
    %c0_10 = arith.constant 0 : index
    %c0_11 = arith.constant 0 : index
    %21 = vector.load %arg4[%c0_10, %c0_11] : memref<2x5xf32, #tpu.memory_space<vmem>>, vector<2x5xf32>
    tpu.vector_store %arg4[%c0_10, %c0_11], %20 {strides = array<i32>} : memref<2x5xf32, #tpu.memory_space<vmem>>, vector<2x5xf32>,
    return
  }
  func.func @transform_0(%arg0: i32) -> (i32, i32, i32) {
    %c0_i32 = arith.constant 0 : i32
    %c0_i32_0 = arith.constant 0 : i32
    %c0_i32_1 = arith.constant 0 : i32
    %c0_i32_2 = arith.constant 0 : i32
    return %c0_i32, %c0_i32_0, %c0_i32_1 : i32, i32, i32
  }
  func.func @transform_1(%arg0: i32) -> (i32, i32) {
    %c0_i32 = arith.constant 0 : i32
    %c0_i32_0 = arith.constant 0 : i32
    %c0_i32_1 = arith.constant 0 : i32
    return %c0_i32, %c0_i32_0 : i32, i32
  }
  func.func @transform_2(%arg0: i32) -> (i32, i32) {
    %c0_i32 = arith.constant 0 : i32
    %c0_i32_0 = arith.constant 0 : i32
    %c0_i32_1 = arith.constant 0 : i32
    return %c0_i32, %c0_i32_0 : i32, i32
  }
  func.func @transform_3(%arg0: i32) -> (i32, i32) {
    %c0_i32 = arith.constant 0 : i32
    %c0_i32_0 = arith.constant 0 : i32
    %c0_i32_1 = arith.constant 0 : i32
    return %c0_i32, %c0_i32_0 : i32, i32
  }
}

</mosaic_0001>

<bundles_post_ra>
// kernel: tile.34
= control target key start
LH: loop header
LB: loop body
LE: loop exit
PB: predicated region body
PF: predicated region fallthrough
CT: control target
= control target key end

     0   :  { %s22_s0 = inlined_call_operand.vmem [shape: f32[8], index: 0, kind: input, shape index: {}]   ;;  %s23_s1 = inlined_call_operand.vmem [shape: f32[4,8], index: 1, kind: output, shape index: {}]  }
   0x1   :  { %v4_v0 = vld [vmem:[%s22_s0] ss:$0 sm:$0xff] }
   0x2   :  { %5 = vst [vmem:[%s23_s1] sm:$0xf] %v4_v0 }

// kernel: tile.35
= control target key start
LH: loop header
LB: loop body
LE: loop exit
PB: predicated region body
PF: predicated region fallthrough
CT: control target
= control target key end

     0   :  { %vm7_vm0 = vcmask 64512   ;;  %s37_s8 = smov 8   ;;  %s38_s9 = smov 16   ;;  %vm13_vm1 = vcmask 261312   ;;  %vm19_vm2 = vcmask 195712   ;;  %vm25_vm3 = vcmask 130112   ;;  %s55_s0 = inlined_call_operand.vmem [shape: f32[4,8], index: 0, kind: input, shape index: {}]   ;;  %s56_s1 = inlined_call_operand.vmem [shape: f32[1,32], index: 1, kind: output, shape index: {}]  }
   0x1   :  { %v4_v0 = vld [vmem:[%s55_s0] sm:$0xf]  ;;  %s36_s0 = smov 24  }
   0x2   :  { %5 = vst [vmem:[#allocation1] sm:$0xf] %v4_v0 }
   0x9   :  { %v10_v1 = vld [vmem:[#allocation1 + $0x3] sm:$0x1]   ;;  %v22_v2 = vld [vmem:[#allocation1 + $0x1] sm:$0x1]   ;;  %v6_v3 = vld [vmem:[#allocation1] sm:$0x1]  }
   0xa   :  { %11 = vrot.lane.b32.xlu0 %v10_v1, %s36_s0  ;;  %23 = vrot.lane.b32.xlu1 %v22_v2, %s37_s8  ;;  %v16_v4 = vld [vmem:[#allocation1 + $0x2] sm:$0x1]   ;;  %8 = vst.msk [vmem:[#allocation0] sm:$0x1] %vm7_vm0, %v6_v3  }
   0xe   :  { %17 = vrot.lane.b32.xlu0 %v16_v4, %s38_s9 }
  0x7c   :  { %v12_v5 = vpop.permute.xlu0 %11   ;;  %v24_v6 = vpop.permute.xlu1 %23  }
  0x7d   :  { %14 = vst.msk [vmem:[#allocation0] sm:$0x1] %vm13_vm1, %v12_v5  }
  0x80   :  { %v18_v7 = vpop.permute.xlu0 %17  }
  0x81   :  { %20 = vst.msk [vmem:[#allocation0] sm:$0x1] %vm19_vm2, %v18_v7  }
  0x82   :  { %26 = vst.msk [vmem:[#allocation0] sm:$0x1] %vm25_vm3, %v24_v6  }
  0x89   :  { %v30_v8 = vld [vmem:[#allocation0] sm:$0x1] }
  0x8a   :  { %32 = vst [vmem:[%s56_s1] sm:$0x1] %v30_v8 }

// kernel: _lambda_.9
= control target key start
LH: loop header
LB: loop body
LE: loop exit
PB: predicated region body
PF: predicated region fallthrough
CT: control target
= control target key end

     0   :  { %s252_s6 = smov 0   ;;  %s273_s0 = inlined_call_operand.vmem [shape: bf16[2,4,5,40], index: 0, kind: input, shape index: {}]   ;;  %s274_s1 = inlined_call_operand.vmem [shape: bf16[2,4,32], index: 1, kind: output, shape index: {}]  }
   0x1 LB: > { %s213_s7 = sadd.s32 4294967295, %s239_s6   ;;  %p217_p0 = scmp.ge.s32.totalorder %s239_s6, 1  ;;  %s239_s6 = sphi %s252_s6, %s11_s6  }
   0x2   : > { %p87_p1 = scmp.lt.s32.totalorder %s239_s6, 3 }
   0x4   : > { %p88_p2 = pnand %p217_p0, %p87_p1 }
   0x5   : > { %p106_p3 = scmp.lt.s32.totalorder (!%p88_p2), %s213_s7, 1  ;;  %s241_s12 = smov (!%p88_p2), 120   ;;  %vm158_vm0 = vcmask (!%p88_p2), 254976  }
   0x6   : > { %91 = sbr.rel (%p88_p2) target bundleno = 147 (0x93), region = 24 }
   0xd   : > { %s276_s7 = smov (!%p106_p3, %s213_s7), 1 }
   0xe   : > { %s223_s8 = sshll.u32 %s276_s7, 4  ;;  %s220_s13 = sshll.u32 %s276_s7, 1 }
   0xf   : > { %s110_s11 = scalar_lea.vmem %s273_s0, %s223_s8  ;;  %s114_s16 = scalar_lea.vmem %s274_s1, %s220_s13 }
  0x10   : > { %v115_v0 = vld [vmem:[%s110_s11] sm:$0x7]  ;;  %v116_v1 = vld [vmem:[%s110_s11 + $0x4] sm:$0x7]  ;;  %v117_v4 = vld [vmem:[%s110_s11 + $0x8] sm:$0x7] }
  0x11   : > { %121 = vrot.lane.b32.xlu0 %v115_v0, %s241_s12  ;;  %v133_v2 = vshrl.u32 %v115_v0, 16  ;;  %v136_v3 = vshll.u32 %v115_v0, 16  ;;  %v119_v5 = vmax.bf16 %v116_v1, %v115_v0  ;;  %v144_v10 = vshrl.u32 %v116_v1, 16  ;;  %v118_v16 = vld [vmem:[%s110_s11 + $0xc] sm:$0x7] }
  0x12   : > { %v147_v11 = vshll.u32 %v116_v1, 16 }
  0x13   : > { %v135_v6 = vrot.slane %v133_v2, 4  ;;  %v138_v7 = vrot.slane %v136_v3, 5  ;;  %v146_v12 = vrot.slane %v144_v10, 4 }
  0x14   : > { %v149_v13 = vrot.slane %v147_v11, 5 }
  0x15   : > { %128 = vrot.lane.b32.xlu0 %v117_v4, %s241_s12  ;;  %v139_v8 = vor.u32 %v138_v7, %v135_v6 }
  0x16   : > { %v150_v18 = vor.u32 %v149_v13, %v146_v12 }
  0x17   : > { %v140_v9 = vrot.slane %v139_v8, 4 }
  0x18   : > { %v151_v22 = vrot.slane %v150_v18, 4 }
  0x19   : > { %154 = vrot.lane.b32.xlu1 %v140_v9, %s241_s12 }
  0x83   : > { %v122_v14 = vpop.permute.xlu0 %121 }
  0x84   : > { %v124_v15 = vmax.bf16 %v122_v14, %v119_v5 }
  0x86   : > { %v125_v17 = vmax.bf16 %v124_v15, %v117_v4 }
  0x87   : > { %v129_v19 = vpop.permute.xlu0 %128 }
  0x88   : > { %v126_v20 = vmax.bf16 %v125_v17, %v118_v16 }
  0x8a   : > { %v131_v21 = vmax.bf16 %v129_v19, %v126_v20 }
  0x8b   : > { %v155_v24 = vpop.permute.xlu1 %154 }
  0x8c   : > { %v142_v23 = vmax.bf16 %v140_v9, %v131_v21 }
  0x8e   : > { %v153_v25 = vmax.bf16 %v151_v22, %v142_v23 }
  0x90   : > { %v157_v26 = vmax.bf16 %v155_v24, %v153_v25 }
  0x92   : > { %159 = vst.msk [vmem:[%s114_s16] sm:$0x3] %vm158_vm0, %v157_v26 }
  0x93 PF: > { %s11_s6 = sadd.s32 1, %s239_s6  }
  0x94   : > { %p8_p4 = scmp.ge.s32.totalorder %s11_s6, 4  }
  0x96   :  { %10 = sbr.rel (!%p8_p4) target bundleno = 1 (0x1), region = 54 }

// kernel: _lambda_.8
= control target key start
LH: loop header
LB: loop body
LE: loop exit
PB: predicated region body
PF: predicated region fallthrough
CT: control target
= control target key end

     0   :  { %s1039_s15 = smov 0   ;;  %s1041_s16 = smov 0   ;;  %s1140_s0 = inlined_call_operand.vmem [shape: bf16[128,256], index: 0, kind: input, shape index: {}]   ;;  %s1141_s1 = inlined_call_operand.vmem [shape: bf16[256,128], index: 1, kind: input, shape index: {}]   ;;  %s1142_s2 = inlined_call_operand.vmem [shape: f32[1,128], index: 2, kind: input, shape index: {}]   ;;  %s1143_s3 = inlined_call_operand.vmem [shape: f32[1,128], index: 3, kind: input, shape index: {}]   ;;  %s1144_s4 = inlined_call_operand.vmem [shape: bf16[128,128], index: 4, kind: output, shape index: {}]  }
   0x1   :  { %s1043_s17 = smov 0  }
   0x2 LB: > { %s33_s18 = sadd.s32 1, %s1008_s16  ;;  %p808_p0 = scmp.ge.s32.totalorder %s1012_s17, 1  ;;  %s1012_s17 = sphi %s1043_s17, %s14_s17   ;;  %s1008_s16 = sphi %s1041_s16, %s1146_s16   ;;  %s1004_s15 = sphi %s1039_s15, %s1145_s15  }
   0x3   : > { %p35_p1 = scmp.ge.s32.totalorder %s33_s18, 2  ;;  %p224_p2 = scmp.lt.s32.totalorder %s1012_s17, 3 }
   0x5   : > { %s1148_s18 = smov (%p35_p1, %s33_s18), 0  ;;  %p225_p3 = pnand %p808_p0, %p224_p2 }
   0x6   : > { %v962_v0 = vld [vmem:[%s1141_s1 + $0x40] sm:$0xff] (!%p225_p3)   ;;  %s809_s21 = sshll.u32 (!%p225_p3), %s1004_s15, 3  ;;  %v964_v2 = vld [vmem:[%s1141_s1 + $0x48] sm:$0xff] (!%p225_p3)   ;;  %v966_v4 = vld [vmem:[%s1141_s1 + $0x50] sm:$0xff] (!%p225_p3)  }
   0x7   : > { %228 = sbr.rel (%p225_p3) target bundleno = 274 (0x112), region = 36  ;;  %v963_v1 = vld [vmem:[%s1141_s1] sm:$0xff] (!%p225_p3)   ;;  %882 = vmatprep.subr.bf16.mxu0 (!%p225_p3), %v962_v0  ;;  %922 = vmatprep.subr.bf16.mxu1 (!%p225_p3), %v962_v0  ;;  %v965_v3 = vld [vmem:[%s1141_s1 + $0x8] sm:$0xff] (!%p225_p3)   ;;  %p274_p4 = scmp.lt.s32.totalorder (!%p225_p3), %s809_s21, 15  ;;  %v967_v5 = vld [vmem:[%s1141_s1 + $0x10] sm:$0xff] (!%p225_p3)  }
   0x8   : > { %883 = vmatpush3.bf16.msra.mxu0 (!%p225_p3), %v963_v1  ;;  %930 = vmatpush3.bf16.msra.mxu1 (!%p225_p3), %v963_v1  ;;  %v968_v6 = vld [vmem:[%s1141_s1 + $0x58] sm:$0xff] (!%p225_p3)   ;;  %v970_v8 = vld [vmem:[%s1141_s1 + $0x60] sm:$0xff] (!%p225_p3)   ;;  %v972_v10 = vld [vmem:[%s1141_s1 + $0x68] sm:$0xff] (!%p225_p3)  }
   0x9   : > { %884 = vmatprep.subr.bf16.mxu0 (!%p225_p3), %v964_v2  ;;  %923 = vmatprep.subr.bf16.mxu1 (!%p225_p3), %v964_v2  ;;  %v969_v7 = vld [vmem:[%s1141_s1 + $0x18] sm:$0xff] (!%p225_p3)   ;;  %v971_v9 = vld [vmem:[%s1141_s1 + $0x20] sm:$0xff] (!%p225_p3)   ;;  %v973_v13 = vld [vmem:[%s1141_s1 + $0x28] sm:$0xff] (!%p225_p3)  }
   0xa   : > { %v974_v14 = vld [vmem:[%s1141_s1 + $0x70] sm:$0xff] (!%p225_p3)   ;;  %v976_v16 = vld [vmem:[%s1141_s1 + $0x78] sm:$0xff] (!%p225_p3)   ;;  %v838_v27 = vld [vmem:[%s1142_s2] ss:$0 sm:$0xff] (!%p225_p3) }
   0xb   : > { %v975_v15 = vld [vmem:[%s1141_s1 + $0x30] sm:$0xff] (!%p225_p3)   ;;  %v977_v17 = vld [vmem:[%s1141_s1 + $0x38] sm:$0xff] (!%p225_p3)   ;;  %v839_v33 = vld [vmem:[%s1143_s3] ss:$0 sm:$0xff] (!%p225_p3) }
   0xc   : > { %885 = vmatpush3.bf16.msra.mxu0 (!%p225_p3), %v965_v3  ;;  %931 = vmatpush3.bf16.msra.mxu1 (!%p225_p3), %v965_v3 }
   0xd   : > { %886 = vmatprep.subr.bf16.mxu0 (!%p225_p3), %v966_v4  ;;  %924 = vmatprep.subr.bf16.mxu1 (!%p225_p3), %v966_v4 }
   0xe   : > { %s1150_s21 = smov (!%p274_p4, %s809_s21), 15 }
   0xf   : > { %s850_s10 = sshll.u32 %s1150_s21, 3  ;;  %s813_s12 = sshll.u32 %s1150_s21, 2 }
  0x10   : > { %887 = vmatpush3.bf16.msra.mxu0 %v967_v5  ;;  %932 = vmatpush3.bf16.msra.mxu1 %v967_v5  ;;  %s1090_s15 = scalar_lea.vmem %s1140_s0, %s850_s10 }
  0x11   : > { %888 = vmatprep.subr.bf16.mxu0 %v968_v6  ;;  %925 = vmatprep.subr.bf16.mxu1 %v968_v6  ;;  %v980_v11 = vld [vmem:[%s1090_s15 + $0x4] ss:$8 sps:$4 sm:$0xff]   ;;  %v978_v18 = vld [vmem:[%s1090_s15] ss:$8 sps:$4 sm:$0xff]   ;;  %v984_v20 = vld [vmem:[%s1090_s15 + $0x14] ss:$8 sps:$4 sm:$0xff]  }
  0x12   : > { %v983_v12 = vld [vmem:[%s1090_s15 + $0x24] ss:$8 sps:$4 sm:$0xff]   ;;  %537 = vmatprep.mubr.bf16.mxu0 %v980_v11  ;;  %v981_v19 = vld [vmem:[%s1090_s15 + $0x20] ss:$8 sps:$4 sm:$0xff]   ;;  %v986_v21 = vld [vmem:[%s1090_s15 + $0x34] ss:$8 sps:$4 sm:$0xff]  }
  0x13   : > { %553 = vmatprep.mubr.bf16.mxu1 %v983_v12  ;;  %v988_v22 = vld [vmem:[%s1090_s15 + $0x10] ss:$8 sps:$4 sm:$0xff]  }
  0x14   : > { %889 = vmatpush3.bf16.msra.mxu0 %v969_v7  ;;  %933 = vmatpush3.bf16.msra.mxu1 %v969_v7  ;;  %v989_v23 = vld [vmem:[%s1090_s15 + $0x30] ss:$8 sps:$4 sm:$0xff]   ;;  %s306_s15 = scalar_lea.vmem %s1144_s4, %s813_s12 }
  0x15   : > { %890 = vmatprep.subr.bf16.mxu0 %v970_v8  ;;  %926 = vmatprep.subr.bf16.mxu1 %v970_v8 }
  0x18   : > { %891 = vmatpush3.bf16.msra.mxu0 %v971_v9  ;;  %934 = vmatpush3.bf16.msra.mxu1 %v971_v9 }
  0x19   : > { %892 = vmatprep.subr.bf16.mxu0 %v972_v10  ;;  %927 = vmatprep.subr.bf16.mxu1 %v972_v10 }
  0x1c   : > { %893 = vmatpush3.bf16.msra.mxu0 %v973_v13  ;;  %935 = vmatpush3.bf16.msra.mxu1 %v973_v13 }
  0x1d   : > { %894 = vmatprep.subr.bf16.mxu0 %v974_v14  ;;  %928 = vmatprep.subr.bf16.mxu1 %v974_v14 }
  0x20   : > { %895 = vmatpush3.bf16.msra.mxu0 %v975_v15  ;;  %936 = vmatpush3.bf16.msra.mxu1 %v975_v15 }
  0x21   : > { %896 = vmatprep.subr.bf16.mxu0 %v976_v16  ;;  %929 = vmatprep.subr.bf16.mxu1 %v976_v16 }
  0x24   : > { %897 = vmatpush3.bf16.msra.mxu0 %v977_v17  ;;  %937 = vmatpush3.bf16.msra.mxu1 %v977_v17 }
  0x27   : > { %538 = vmatmul.mubr.bf16.vlgmr.msra.gmra.mrb[0].mxu0 %v978_v18  ;;  %554 = vmatmul.mubr.bf16.vlgmr.msra.gmra.mrb[0].mxu1 %v981_v19 }
  0x28   : > { %545 = vmatprep.mubr.bf16.mxu0 %v984_v20  ;;  %561 = vmatprep.mubr.bf16.mxu1 %v986_v21 }
  0x2f   : > { %546 = vmatmul.mubr.bf16.gmra.mrb[4].mxu0 %v988_v22  ;;  %562 = vmatmul.mubr.bf16.gmra.mrb[4].mxu1 %v989_v23 }
  0xfa   : > { %v898_v24 = vpop.f32.mrb[0].mxu0  ;;  %v910_v25 = vpop.f32.mrb[0].mxu1 }
  0xfb   : > { %v899_v26 = vpop.f32.mrb[1].mxu0  ;;  %v911_v28 = vpop.f32.mrb[1].mxu1 }
  0xfc   : > { %v900_v29 = vadd.f32 %v899_v26, %v898_v24  ;;  %v912_v30 = vadd.f32 %v911_v28, %v910_v25  ;;  %v901_v31 = vpop.f32.mrb[2].mxu0  ;;  %v913_v32 = vpop.f32.mrb[2].mxu1 }
  0xfd   : > { %v902_v34 = vpop.f32.mrb[3].mxu0  ;;  %v914_v35 = vpop.f32.mrb[3].mxu1 }
  0xfe   : > { %v604_v36 = vmul.f32 %v900_v29, %v838_v27  ;;  %v608_v37 = vmul.f32 %v912_v30, %v838_v27  ;;  %v903_v38 = vadd.f32 %v902_v34, %v901_v31  ;;  %v915_v39 = vadd.f32 %v914_v35, %v913_v32 }
 0x100   : > { %v619_v40 = vadd.f32 %v839_v33, %v604_v36  ;;  %v623_v41 = vadd.f32 %v839_v33, %v608_v37  ;;  %v605_v42 = vmul.f32 %v903_v38, %v838_v27  ;;  %v609_v43 = vmul.f32 %v915_v39, %v838_v27 }
 0x102   : > { %v620_v44 = vadd.f32 %v839_v33, %v605_v42  ;;  %v624_v45 = vadd.f32 %v839_v33, %v609_v43  ;;  %v904_v46 = vpop.f32.mrb[4].mxu0  ;;  %v916_v47 = vpop.f32.mrb[4].mxu1  ;;  %v627_v48 = vmax.f32 %v619_v40, 0.0  ;;  %v631_v49 = vmax.f32 %v623_v41, 0.0 }
 0x103   : > { %v905_v50 = vpop.f32.mrb[5].mxu0  ;;  %v917_v51 = vpop.f32.mrb[5].mxu1 }
 0x104   : > { %v628_v52 = vmax.f32 %v620_v44, 0.0  ;;  %v632_v53 = vmax.f32 %v624_v45, 0.0  ;;  %v906_v54 = vadd.f32 %v905_v50, %v904_v46  ;;  %v918_v55 = vadd.f32 %v917_v51, %v916_v47  ;;  %v907_v56 = vpop.f32.mrb[6].mxu0  ;;  %v919_v57 = vpop.f32.mrb[6].mxu1 }
 0x105   : > { %v908_v58 = vpop.f32.mrb[7].mxu0  ;;  %v920_v59 = vpop.f32.mrb[7].mxu1 }
 0x106   : > { %v862_v60 = vpack.c.bf16 %v628_v52, %v627_v48  ;;  %v872_v61 = vpack.c.bf16 %v632_v53, %v631_v49  ;;  %v606_v62 = vmul.f32 %v906_v54, %v838_v27  ;;  %v610_v63 = vmul.f32 %v918_v55, %v838_v27 }
 0x107   : > { %v909_v0 = vadd.f32 %v908_v58, %v907_v56  ;;  %v921_v1 = vadd.f32 %v920_v59, %v919_v57 }
 0x108   : > { %863 = vst [vmem:[%s306_s15] sm:$0xff] %v862_v60   ;;  %880 = vst [vmem:[%s306_s15 + $0x10] sm:$0xff] %v872_v61   ;;  %v621_v2 = vadd.f32 %v839_v33, %v606_v62  ;;  %v625_v3 = vadd.f32 %v839_v33, %v610_v63 }
 0x109   : > { %v607_v4 = vmul.f32 %v909_v0, %v838_v27  ;;  %v611_v5 = vmul.f32 %v921_v1, %v838_v27 }
 0x10a   : > { %v629_v8 = vmax.f32 %v621_v2, 0.0  ;;  %v633_v9 = vmax.f32 %v625_v3, 0.0 }
 0x10b   : > { %v622_v6 = vadd.f32 %v839_v33, %v607_v4  ;;  %v626_v7 = vadd.f32 %v839_v33, %v611_v5 }
 0x10d   : > { %v630_v10 = vmax.f32 %v622_v6, 0.0  ;;  %v634_v11 = vmax.f32 %v626_v7, 0.0 }
 0x10f   : > { %v867_v12 = vpack.c.bf16 %v630_v10, %v629_v8  ;;  %v877_v13 = vpack.c.bf16 %v634_v11, %v633_v9 }
 0x111   : > { %879 = vst [vmem:[%s306_s15 + $0x8] sm:$0xff] %v867_v12   ;;  %881 = vst [vmem:[%s306_s15 + $0x18] sm:$0xff] %v877_v13  }
 0x112 PF: > { %s14_s17 = sadd.s32 1, %s1012_s17   ;;  %s1145_s15 = smov %s1008_s16 }
 0x113   : > { %p11_p5 = scmp.ge.s32.totalorder %s14_s17, 4   ;;  %s1146_s16 = smov %s1148_s18 }
 0x115   :  { %13 = sbr.rel (!%p11_p5) target bundleno = 2 (0x2), region = 83 }

// kernel: tile.50
= control target key start
LH: loop header
LB: loop body
LE: loop exit
PB: predicated region body
PF: predicated region fallthrough
CT: control target
= control target key end

     0   :  { %s22_s0 = inlined_call_operand.vmem [shape: f32[16], index: 0, kind: input, shape index: {}]   ;;  %s23_s1 = inlined_call_operand.vmem [shape: f32[4,16], index: 1, kind: output, shape index: {}]  }
   0x1   :  { %v4_v0 = vld [vmem:[%s22_s0] ss:$0 sm:$0xff] }
   0x2   :  { %5 = vst [vmem:[%s23_s1] sm:$0xf] %v4_v0 }

// kernel: tile.51
= control target key start
LH: loop header
LB: loop body
LE: loop exit
PB: predicated region body
PF: predicated region fallthrough
CT: control target
= control target key end

     0   :  { %vm7_vm0 = vcmask 130048   ;;  %s37_s8 = smov 16   ;;  %s38_s9 = smov 32   ;;  %vm13_vm1 = vcmask 523648   ;;  %vm19_vm2 = vcmask 392448   ;;  %vm25_vm3 = vcmask 261248   ;;  %s55_s0 = inlined_call_operand.vmem [shape: f32[4,16], index: 0, kind: input, shape index: {}]   ;;  %s56_s1 = inlined_call_operand.vmem [shape: f32[1,64], index: 1, kind: output, shape index: {}]  }
   0x1   :  { %v4_v0 = vld [vmem:[%s55_s0] sm:$0xf]  ;;  %s36_s0 = smov 48  }
   0x2   :  { %5 = vst [vmem:[#allocation1] sm:$0xf] %v4_v0 }
   0x9   :  { %v10_v1 = vld [vmem:[#allocation1 + $0x3] sm:$0x1]   ;;  %v22_v2 = vld [vmem:[#allocation1 + $0x1] sm:$0x1]   ;;  %v6_v3 = vld [vmem:[#allocation1] sm:$0x1]  }
   0xa   :  { %11 = vrot.lane.b32.xlu0 %v10_v1, %s36_s0  ;;  %23 = vrot.lane.b32.xlu1 %v22_v2, %s37_s8  ;;  %v16_v4 = vld [vmem:[#allocation1 + $0x2] sm:$0x1]   ;;  %8 = vst.msk [vmem:[#allocation0] sm:$0x1] %vm7_vm0, %v6_v3  }
   0xe   :  { %17 = vrot.lane.b32.xlu0 %v16_v4, %s38_s9 }
  0x7c   :  { %v12_v5 = vpop.permute.xlu0 %11   ;;  %v24_v6 = vpop.permute.xlu1 %23  }
  0x7d   :  { %14 = vst.msk [vmem:[#allocation0] sm:$0x1] %vm13_vm1, %v12_v5  }
  0x80   :  { %v18_v7 = vpop.permute.xlu0 %17  }
  0x81   :  { %20 = vst.msk [vmem:[#allocation0] sm:$0x1] %vm19_vm2, %v18_v7  }
  0x82   :  { %26 = vst.msk [vmem:[#allocation0] sm:$0x1] %vm25_vm3, %v24_v6  }
  0x89   :  { %v30_v8 = vld [vmem:[#allocation0] sm:$0x1] }
  0x8a   :  { %32 = vst [vmem:[%s56_s1] sm:$0x1] %v30_v8 }

// kernel: _lambda_.11
= control target key start
LH: loop header
LB: loop body
LE: loop exit
PB: predicated region body
PF: predicated region fallthrough
CT: control target
= control target key end

     0   :  { %s687_s18 = smov 0   ;;  %s750_s0 = inlined_call_operand.vmem [shape: bf16[2,6,48], index: 0, kind: input, shape index: {}]   ;;  %s751_s1 = inlined_call_operand.vmem [shape: bf16[3,48,32], index: 1, kind: input, shape index: {}]   ;;  %s752_s2 = inlined_call_operand.vmem [shape: f32[1,32], index: 2, kind: input, shape index: {}]   ;;  %s753_s3 = inlined_call_operand.vmem [shape: f32[1,32], index: 3, kind: input, shape index: {}]   ;;  %s754_s4 = inlined_call_operand.vmem [shape: bf16[2,4,32], index: 4, kind: input, shape index: {}]   ;;  %s755_s5 = inlined_call_operand.vmem [shape: bf16[2,4,32], index: 5, kind: output, shape index: {}]  }
   0x1 LB: > { %s543_s19 = sadd.s32 4294967295, %s653_s18   ;;  %p547_p0 = scmp.ge.s32.totalorder %s653_s18, 1  ;;  %s653_s18 = sphi %s687_s18, %s15_s18  }
   0x2   : > { %p195_p1 = scmp.lt.s32.totalorder %s653_s18, 3 }
   0x4   : > { %p196_p2 = pnand %p547_p0, %p195_p1 }
   0x5   : > { %v637_v0 = vld [vmem:[%s751_s1] sm:$0xff] (!%p196_p2)   ;;  %v655_v1 = vmov (!%p196_p2), 0.0   ;;  %v638_v2 = vld [vmem:[%s751_s1 + $0x8] sm:$0xff] (!%p196_p2)   ;;  %vm656_vm0 = vmmov (!%p196_p2), 0   ;;  %p225_p3 = scmp.lt.s32.totalorder (!%p196_p2), %s543_s19, 1  ;;  %v640_v3 = vld [vmem:[%s751_s1 + $0x18] sm:$0xff] (!%p196_p2)  }
   0x6   : > { %199 = sbr.rel (%p196_p2) target bundleno = 255 (0xff), region = 40  ;;  %602 = vmatprep.subr.bf16.mxu0 (!%p196_p2), %v655_v1  ;;  %592 = vmatprep.subr.bf16.mxu1 (!%p196_p2), %v655_v1  ;;  %v643_v4 = vld [vmem:[%s751_s1 + $0x20] sm:$0xff] (!%p196_p2)   ;;  %v639_v5 = vld [vmem:[%s751_s1 + $0x10] sm:$0xff] (!%p196_p2)   ;;  %v645_v8 = vld [vmem:[%s751_s1 + $0x28] sm:$0xff] (!%p196_p2)   ;;  %vm280_vm1 = vcmask (!%p196_p2), 392192   ;;  %vm476_vm2 = vcmask (!%p196_p2), 254976  }
   0x7   : > { %603 = vmatpush3.bf16.msra.mxu0 (!%p196_p2), %v637_v0  ;;  %608 = vmatprep.mubr.msk.bf16.mxu0 (!%p196_p2), %vm656_vm0, %v655_v1  ;;  %v642_v9 = vld [vmem:[%s751_s1 + $0x30] sm:$0xff] (!%p196_p2)   ;;  %v644_v13 = vld [vmem:[%s751_s1 + $0x38] sm:$0xff] (!%p196_p2)   ;;  %v646_v15 = vld [vmem:[%s751_s1 + $0x40] sm:$0xff] (!%p196_p2)  }
   0x8   : > { %604 = vmatprep.subr.bf16.mxu0 (!%p196_p2), %v655_v1  ;;  %598 = vmatprep.mubr.msk.bf16.mxu1 (!%p196_p2), %vm656_vm0, %v655_v1  ;;  %v576_v22 = vld [vmem:[%s752_s2] ss:$0 sm:$0xff] (!%p196_p2) }
   0x9   : > { %593 = vmatpush3.bf16.msra.mxu1 (!%p196_p2), %v640_v3  ;;  %v577_v26 = vld [vmem:[%s753_s3] ss:$0 sm:$0xff] (!%p196_p2) }
   0xa   : > { %594 = vmatprep.subr.bf16.mxu1 (!%p196_p2), %v655_v1 }
   0xb   : > { %605 = vmatpush3.bf16.msra.mxu0 (!%p196_p2), %v638_v2 }
   0xc   : > { %606 = vmatprep.subr.bf16.mxu0 (!%p196_p2), %v655_v1 }
   0xd   : > { %s757_s19 = smov (!%p225_p3, %s543_s19), 1  ;;  %595 = vmatpush3.bf16.msra.mxu1 %v643_v4 }
   0xe   : > { %s548_s30 = sshll.u32 %s757_s19, 2  ;;  %596 = vmatprep.subr.bf16.mxu1 %v655_v1  ;;  %s549_s17 = sshll.u32 %s757_s19, 1 }
   0xf   : > { %s228_s8 = scalar_lea.vmem %s750_s0, %s548_s30  ;;  %607 = vmatpush3.bf16.msra.mxu0 %v639_v5  ;;  %s232_s22 = scalar_lea.vmem %s754_s4, %s549_s17 }
  0x10   : > { %v238_v6 = vld [vmem:[%s228_s8] sm:$0x7]  ;;  %612 = vmatprep.subr.bf16.mxu0 %v655_v1  ;;  %s236_s28 = scalar_lea.vmem %s755_s5, %s549_s17 }
  0x11   : > { %v557_v7 = vcombine.low %v238_v6, %v238_v6  ;;  %597 = vmatpush3.bf16.msra.mxu1 %v645_v8  ;;  %v471_v23 = vld [vmem:[%s232_s22] sm:$0x3] }
  0x12   : > { %609 = vmatmul.mubr.msk.bf16.vlgmr.msra.gmra.mrb[0].mxu0 %vm280_vm1, %v238_v6  ;;  %v472_v29 = vunpack.c.l.bf16 %v471_v23 }
  0x13   : > { %v256_v10 = vshrl.u32 %v557_v7, 16  ;;  %v258_v11 = vshll.u32 %v557_v7, 16  ;;  %613 = vmatpush3.bf16.msra.mxu0 %v642_v9  ;;  %618 = vmatprep.mubr.msk.bf16.mxu0 %vm656_vm0, %v655_v1  ;;  %v392_v16 = vrot.slane %v557_v7, 1 }
  0x14   : > { %614 = vmatprep.subr.bf16.mxu0 %v655_v1 }
  0x15   : > { %v260_v12 = vrot.slane %v258_v11, 1 }
  0x17   : > { %v261_v14 = vor.u32 %v260_v12, %v256_v10  ;;  %615 = vmatpush3.bf16.msra.mxu0 %v644_v13 }
  0x18   : > { %616 = vmatprep.subr.bf16.mxu0 %v655_v1 }
  0x19   : > { %599 = vmatmul.mubr.msk.bf16.vlgmr.msra.gmra.mrb[0].mxu1 %vm280_vm1, %v261_v14 }
  0x1b   : > { %617 = vmatpush3.bf16.msra.mxu0 %v646_v15 }
  0x1e   : > { %619 = vmatmul.mubr.msk.bf16.vlgmr.msra.gmra.mrb[0].mxu0 %vm280_vm1, %v392_v16 }
  0xec   : > { %v318_v17 = vpop.f32.mrb[0].mxu1 }
  0xed   : > { %v600_v18 = vpop.f32.mrb[1].mxu1 }
  0xee   : > { %v321_v19 = vpop.f32.mrb[2].mxu1 }
  0xef   : > { %v601_v20 = vpop.f32.mrb[3].mxu1 }
  0xf1   : > { %v448_v21 = vpop.f32.mrb[0].mxu0 }
  0xf2   : > { %v622_v24 = vadd.f32 %v448_v21, %v318_v17  ;;  %v620_v25 = vpop.f32.mrb[1].mxu0 }
  0xf3   : > { %v451_v27 = vpop.f32.mrb[2].mxu0 }
  0xf4   : > { %v462_v28 = vmul.f32 %v622_v24, %v576_v22  ;;  %v621_v30 = vpop.f32.mrb[3].mxu0 }
  0xf6   : > { %v470_v31 = vadd.f32 %v577_v26, %v462_v28 }
  0xf8   : > { %v473_v32 = vadd.f32 %v472_v29, %v470_v31 }
  0xfa   : > { %v474_v33 = vmax.f32 %v473_v32, 0.0 }
  0xfc   : > { %v475_v34 = vpack.c.bf16 %v474_v33, %v474_v33 }
  0xfe   : > { %477 = vst.msk [vmem:[%s236_s28] sm:$0x3] %vm476_vm2, %v475_v34 }
  0xff PF: > { %s15_s18 = sadd.s32 1, %s653_s18  }
 0x100   : > { %p12_p4 = scmp.ge.s32.totalorder %s15_s18, 4  }
 0x102   :  { %14 = sbr.rel (!%p12_p4) target bundleno = 1 (0x1), region = 75 }

// kernel: _lambda_.10
= control target key start
LH: loop header
LB: loop body
LE: loop exit
PB: predicated region body
PF: predicated region fallthrough
CT: control target
= control target key end

     0   :  { %s622_s15 = smov 0   ;;  %s682_s0 = inlined_call_operand.vmem [shape: bf16[2,6,48], index: 0, kind: input, shape index: {}]   ;;  %s683_s1 = inlined_call_operand.vmem [shape: bf16[3,48,32], index: 1, kind: input, shape index: {}]   ;;  %s684_s2 = inlined_call_operand.vmem [shape: f32[1,32], index: 2, kind: input, shape index: {}]   ;;  %s685_s3 = inlined_call_operand.vmem [shape: f32[1,32], index: 3, kind: input, shape index: {}]   ;;  %s686_s4 = inlined_call_operand.vmem [shape: bf16[2,4,32], index: 4, kind: output, shape index: {}]  }
   0x1 LB: > { %s484_s16 = sadd.s32 4294967295, %s593_s15   ;;  %p488_p0 = scmp.ge.s32.totalorder %s593_s15, 1  ;;  %s593_s15 = sphi %s622_s15, %s14_s15  }
   0x2   : > { %p161_p1 = scmp.lt.s32.totalorder %s593_s15, 3 }
   0x4   : > { %p162_p2 = pnand %p488_p0, %p161_p1 }
   0x5   : > { %v577_v0 = vld [vmem:[%s683_s1] sm:$0xff] (!%p162_p2)   ;;  %v595_v1 = vmov (!%p162_p2), 0.0   ;;  %v578_v2 = vld [vmem:[%s683_s1 + $0x8] sm:$0xff] (!%p162_p2)   ;;  %vm596_vm0 = vmmov (!%p162_p2), 0   ;;  %p185_p3 = scmp.lt.s32.totalorder (!%p162_p2), %s484_s16, 1  ;;  %v580_v3 = vld [vmem:[%s683_s1 + $0x18] sm:$0xff] (!%p162_p2)  }
   0x6   : > { %165 = sbr.rel (%p162_p2) target bundleno = 253 (0xfd), region = 36  ;;  %542 = vmatprep.subr.bf16.mxu0 (!%p162_p2), %v595_v1  ;;  %532 = vmatprep.subr.bf16.mxu1 (!%p162_p2), %v595_v1  ;;  %v583_v4 = vld [vmem:[%s683_s1 + $0x20] sm:$0xff] (!%p162_p2)   ;;  %v579_v5 = vld [vmem:[%s683_s1 + $0x10] sm:$0xff] (!%p162_p2)   ;;  %v585_v8 = vld [vmem:[%s683_s1 + $0x28] sm:$0xff] (!%p162_p2)   ;;  %vm236_vm1 = vcmask (!%p162_p2), 392192   ;;  %vm429_vm2 = vcmask (!%p162_p2), 254976  }
   0x7   : > { %543 = vmatpush3.bf16.msra.mxu0 (!%p162_p2), %v577_v0  ;;  %548 = vmatprep.mubr.msk.bf16.mxu0 (!%p162_p2), %vm596_vm0, %v595_v1  ;;  %v582_v9 = vld [vmem:[%s683_s1 + $0x30] sm:$0xff] (!%p162_p2)   ;;  %v584_v13 = vld [vmem:[%s683_s1 + $0x38] sm:$0xff] (!%p162_p2)   ;;  %v586_v15 = vld [vmem:[%s683_s1 + $0x40] sm:$0xff] (!%p162_p2)  }
   0x8   : > { %544 = vmatprep.subr.bf16.mxu0 (!%p162_p2), %v595_v1  ;;  %538 = vmatprep.mubr.msk.bf16.mxu1 (!%p162_p2), %vm596_vm0, %v595_v1  ;;  %v516_v22 = vld [vmem:[%s684_s2] ss:$0 sm:$0xff] (!%p162_p2) }
   0x9   : > { %533 = vmatpush3.bf16.msra.mxu1 (!%p162_p2), %v580_v3  ;;  %v517_v25 = vld [vmem:[%s685_s3] ss:$0 sm:$0xff] (!%p162_p2) }
   0xa   : > { %534 = vmatprep.subr.bf16.mxu1 (!%p162_p2), %v595_v1 }
   0xb   : > { %545 = vmatpush3.bf16.msra.mxu0 (!%p162_p2), %v578_v2 }
   0xc   : > { %546 = vmatprep.subr.bf16.mxu0 (!%p162_p2), %v595_v1 }
   0xd   : > { %s688_s16 = smov (!%p185_p3, %s484_s16), 1  ;;  %535 = vmatpush3.bf16.msra.mxu1 %v583_v4 }
   0xe   : > { %s489_s27 = sshll.u32 %s688_s16, 2  ;;  %536 = vmatprep.subr.bf16.mxu1 %v595_v1  ;;  %s490_s19 = sshll.u32 %s688_s16, 1 }
   0xf   : > { %s188_s30 = scalar_lea.vmem %s682_s0, %s489_s27  ;;  %547 = vmatpush3.bf16.msra.mxu0 %v579_v5  ;;  %s192_s22 = scalar_lea.vmem %s686_s4, %s490_s19 }
  0x10   : > { %v194_v6 = vld [vmem:[%s188_s30] sm:$0x7]  ;;  %552 = vmatprep.subr.bf16.mxu0 %v595_v1 }
  0x11   : > { %v497_v7 = vcombine.low %v194_v6, %v194_v6  ;;  %537 = vmatpush3.bf16.msra.mxu1 %v585_v8 }
  0x12   : > { %549 = vmatmul.mubr.msk.bf16.vlgmr.msra.gmra.mrb[0].mxu0 %vm236_vm1, %v194_v6 }
  0x13   : > { %v212_v10 = vshrl.u32 %v497_v7, 16  ;;  %v214_v11 = vshll.u32 %v497_v7, 16  ;;  %553 = vmatpush3.bf16.msra.mxu0 %v582_v9  ;;  %558 = vmatprep.mubr.msk.bf16.mxu0 %vm596_vm0, %v595_v1  ;;  %v348_v16 = vrot.slane %v497_v7, 1 }
  0x14   : > { %554 = vmatprep.subr.bf16.mxu0 %v595_v1 }
  0x15   : > { %v216_v12 = vrot.slane %v214_v11, 1 }
  0x17   : > { %v217_v14 = vor.u32 %v216_v12, %v212_v10  ;;  %555 = vmatpush3.bf16.msra.mxu0 %v584_v13 }
  0x18   : > { %556 = vmatprep.subr.bf16.mxu0 %v595_v1 }
  0x19   : > { %539 = vmatmul.mubr.msk.bf16.vlgmr.msra.gmra.mrb[0].mxu1 %vm236_vm1, %v217_v14 }
  0x1b   : > { %557 = vmatpush3.bf16.msra.mxu0 %v586_v15 }
  0x1e   : > { %559 = vmatmul.mubr.msk.bf16.vlgmr.msra.gmra.mrb[0].mxu0 %vm236_vm1, %v348_v16 }
  0xec   : > { %v274_v17 = vpop.f32.mrb[0].mxu1 }
  0xed   : > { %v540_v18 = vpop.f32.mrb[1].mxu1 }
  0xee   : > { %v277_v19 = vpop.f32.mrb[2].mxu1 }
  0xef   : > { %v541_v20 = vpop.f32.mrb[3].mxu1 }
  0xf1   : > { %v404_v21 = vpop.f32.mrb[0].mxu0 }
  0xf2   : > { %v562_v23 = vadd.f32 %v404_v21, %v274_v17  ;;  %v560_v24 = vpop.f32.mrb[1].mxu0 }
  0xf3   : > { %v407_v26 = vpop.f32.mrb[2].mxu0 }
  0xf4   : > { %v418_v27 = vmul.f32 %v562_v23, %v516_v22  ;;  %v561_v28 = vpop.f32.mrb[3].mxu0 }
  0xf6   : > { %v426_v29 = vadd.f32 %v517_v25, %v418_v27 }
  0xf8   : > { %v427_v30 = vmax.f32 %v426_v29, 0.0 }
  0xfa   : > { %v428_v31 = vpack.c.bf16 %v427_v30, %v427_v30 }
  0xfc   : > { %430 = vst.msk [vmem:[%s192_s22] sm:$0x3] %vm429_vm2, %v428_v31 }
  0xfd PF: > { %s14_s15 = sadd.s32 1, %s593_s15  }
  0xfe   : > { %p11_p4 = scmp.ge.s32.totalorder %s14_s15, 4  }
 0x100   :  { %13 = sbr.rel (!%p11_p4) target bundleno = 1 (0x1), region = 68 }

// kernel: _lambda_.14
= control target key start
LH: loop header
LB: loop body
LE: loop exit
PB: predicated region body
PF: predicated region fallthrough
CT: control target
= control target key end

     0   :  { %s816_s18 = smov 0   ;;  %s927_s0 = inlined_call_operand.vmem [shape: bf16[2,6,96], index: 0, kind: input, shape index: {}]   ;;  %s928_s1 = inlined_call_operand.vmem [shape: bf16[3,96,64], index: 1, kind: input, shape index: {}]   ;;  %s929_s2 = inlined_call_operand.vmem [shape: f32[1,64], index: 2, kind: input, shape index: {}]   ;;  %s930_s3 = inlined_call_operand.vmem [shape: f32[1,64], index: 3, kind: input, shape index: {}]   ;;  %s931_s4 = inlined_call_operand.vmem [shape: bf16[2,4,64], index: 4, kind: input, shape index: {}]   ;;  %s932_s5 = inlined_call_operand.vmem [shape: bf16[2,4,64], index: 5, kind: output, shape index: {}]  }
   0x1 LB: > { %s615_s19 = sadd.s32 4294967295, %s782_s18   ;;  %p619_p0 = scmp.ge.s32.totalorder %s782_s18, 1  ;;  %s782_s18 = sphi %s816_s18, %s15_s18  }
   0x2   : > { %p195_p1 = scmp.lt.s32.totalorder %s782_s18, 3 }
   0x4   : > { %p196_p2 = pnand %p619_p0, %p195_p1 }
   0x5   : > { %v757_v0 = vld [vmem:[%s928_s1] sm:$0xff] (!%p196_p2)   ;;  %v784_v1 = vmov (!%p196_p2), 0.0   ;;  %v758_v2 = vld [vmem:[%s928_s1 + $0x8] sm:$0xff] (!%p196_p2)   ;;  %vm785_vm0 = vmmov (!%p196_p2), 0   ;;  %p225_p3 = scmp.lt.s32.totalorder (!%p196_p2), %s615_s19, 1  ;;  %v759_v3 = vld [vmem:[%s928_s1 + $0x10] sm:$0xff] (!%p196_p2)  }
   0x6   : > { %199 = sbr.rel (%p196_p2) target bundleno = 279 (0x117), region = 40  ;;  %710 = vmatprep.subr.bf16.mxu0 (!%p196_p2), %v784_v1  ;;  %694 = vmatprep.subr.bf16.mxu1 (!%p196_p2), %v784_v1  ;;  %v763_v4 = vld [vmem:[%s928_s1 + $0x30] sm:$0xff] (!%p196_p2)   ;;  %v766_v5 = vld [vmem:[%s928_s1 + $0x38] sm:$0xff] (!%p196_p2)   ;;  %v768_v7 = vld [vmem:[%s928_s1 + $0x40] sm:$0xff] (!%p196_p2)   ;;  %vm310_vm1 = vcmask (!%p196_p2), 785408   ;;  %vm548_vm2 = vcmask (!%p196_p2), 517120  }
   0x7   : > { %711 = vmatpush3.bf16.msra.mxu0 (!%p196_p2), %v757_v0  ;;  %722 = vmatprep.mubr.msk.bf16.mxu0 (!%p196_p2), %vm785_vm0, %v784_v1  ;;  %v760_v6 = vld [vmem:[%s928_s1 + $0x18] sm:$0xff] (!%p196_p2)   ;;  %v761_v8 = vld [vmem:[%s928_s1 + $0x20] sm:$0xff] (!%p196_p2)   ;;  %v770_v11 = vld [vmem:[%s928_s1 + $0x48] sm:$0xff] (!%p196_p2)  }
   0x8   : > { %712 = vmatprep.subr.bf16.mxu0 (!%p196_p2), %v784_v1  ;;  %706 = vmatprep.mubr.msk.bf16.mxu1 (!%p196_p2), %vm785_vm0, %v784_v1  ;;  %v762_v12 = vld [vmem:[%s928_s1 + $0x28] sm:$0xff] (!%p196_p2)   ;;  %v772_v14 = vld [vmem:[%s928_s1 + $0x50] sm:$0xff] (!%p196_p2)   ;;  %v765_v15 = vld [vmem:[%s928_s1 + $0x60] sm:$0xff] (!%p196_p2)  }
   0x9   : > { %695 = vmatpush3.bf16.msra.mxu1 (!%p196_p2), %v763_v4  ;;  %v774_v18 = vld [vmem:[%s928_s1 + $0x58] sm:$0xff] (!%p196_p2)   ;;  %v767_v19 = vld [vmem:[%s928_s1 + $0x68] sm:$0xff] (!%p196_p2)   ;;  %v769_v21 = vld [vmem:[%s928_s1 + $0x70] sm:$0xff] (!%p196_p2)  }
   0xa   : > { %696 = vmatprep.subr.bf16.mxu1 (!%p196_p2), %v784_v1  ;;  %v771_v22 = vld [vmem:[%s928_s1 + $0x78] sm:$0xff] (!%p196_p2)   ;;  %v773_v23 = vld [vmem:[%s928_s1 + $0x80] sm:$0xff] (!%p196_p2)   ;;  %v775_v24 = vld [vmem:[%s928_s1 + $0x88] sm:$0xff] (!%p196_p2)  }
   0xb   : > { %713 = vmatpush3.bf16.msra.mxu0 (!%p196_p2), %v758_v2  ;;  %v669_v31 = vld [vmem:[%s929_s2] ss:$0 sm:$0xff] (!%p196_p2) }
   0xc   : > { %714 = vmatprep.subr.bf16.mxu0 (!%p196_p2), %v784_v1  ;;  %v670_v35 = vld [vmem:[%s930_s3] ss:$0 sm:$0xff] (!%p196_p2) }
   0xd   : > { %s934_s19 = smov (!%p225_p3, %s615_s19), 1  ;;  %697 = vmatpush3.bf16.msra.mxu1 %v766_v5 }
   0xe   : > { %s620_s28 = sshll.u32 %s934_s19, 2  ;;  %698 = vmatprep.subr.bf16.mxu1 %v784_v1  ;;  %s621_s12 = sshll.u32 %s934_s19, 1 }
   0xf   : > { %715 = vmatpush3.bf16.msra.mxu0 %v759_v3  ;;  %s228_s10 = scalar_lea.vmem %s927_s0, %s620_s28  ;;  %s232_s15 = scalar_lea.vmem %s931_s4, %s621_s12 }
  0x10   : > { %716 = vmatprep.subr.bf16.mxu0 %v784_v1  ;;  %v238_v9 = vld [vmem:[%s228_s10] sm:$0x7]  ;;  %s236_s23 = scalar_lea.vmem %s932_s5, %s621_s12 }
  0x11   : > { %v635_v10 = vcombine.low %v238_v9, %v238_v9  ;;  %699 = vmatpush3.bf16.msra.mxu1 %v768_v7  ;;  %v543_v32 = vld [vmem:[%s232_s15] sm:$0x3] }
  0x12   : > { %700 = vmatprep.subr.bf16.mxu1 %v784_v1  ;;  %v544_v38 = vunpack.c.l.bf16 %v543_v32 }
  0x13   : > { %717 = vmatpush3.bf16.msra.mxu0 %v760_v6  ;;  %v270_v13 = vshll.u32 %v635_v10, 16  ;;  %v268_v16 = vshrl.u32 %v635_v10, 16  ;;  %v446_v25 = vrot.slane %v635_v10, 1 }
  0x14   : > { %718 = vmatprep.subr.bf16.mxu0 %v784_v1 }
  0x15   : > { %701 = vmatpush3.bf16.msra.mxu1 %v770_v11  ;;  %v272_v17 = vrot.slane %v270_v13, 1 }
  0x16   : > { %702 = vmatprep.subr.bf16.mxu1 %v784_v1 }
  0x17   : > { %719 = vmatpush3.bf16.msra.mxu0 %v761_v8  ;;  %v273_v20 = vor.u32 %v272_v17, %v268_v16 }
  0x18   : > { %720 = vmatprep.subr.bf16.mxu0 %v784_v1 }
  0x19   : > { %703 = vmatpush3.bf16.msra.mxu1 %v772_v14 }
  0x1a   : > { %704 = vmatprep.subr.bf16.mxu1 %v784_v1 }
  0x1b   : > { %721 = vmatpush3.bf16.msra.mxu0 %v762_v12 }
  0x1c   : > { %726 = vmatprep.subr.bf16.mxu0 %v784_v1 }
  0x1d   : > { %705 = vmatpush3.bf16.msra.mxu1 %v774_v18 }
  0x1e   : > { %723 = vmatmul.mubr.msk.bf16.vlgmr.msra.gmra.mrb[0].mxu0 %vm310_vm1, %v238_v9 }
  0x1f   : > { %727 = vmatpush3.bf16.msra.mxu0 %v765_v15  ;;  %738 = vmatprep.mubr.msk.bf16.mxu0 %vm785_vm0, %v784_v1 }
  0x20   : > { %728 = vmatprep.subr.bf16.mxu0 %v784_v1  ;;  %707 = vmatmul.mubr.msk.bf16.vlgmr.msra.gmra.mrb[0].mxu1 %vm310_vm1, %v273_v20 }
  0x23   : > { %729 = vmatpush3.bf16.msra.mxu0 %v767_v19 }
  0x24   : > { %730 = vmatprep.subr.bf16.mxu0 %v784_v1 }
  0x27   : > { %731 = vmatpush3.bf16.msra.mxu0 %v769_v21 }
  0x28   : > { %732 = vmatprep.subr.bf16.mxu0 %v784_v1 }
  0x2b   : > { %733 = vmatpush3.bf16.msra.mxu0 %v771_v22 }
  0x2c   : > { %734 = vmatprep.subr.bf16.mxu0 %v784_v1 }
  0x2f   : > { %735 = vmatpush3.bf16.msra.mxu0 %v773_v23 }
  0x30   : > { %736 = vmatprep.subr.bf16.mxu0 %v784_v1 }
  0x33   : > { %737 = vmatpush3.bf16.msra.mxu0 %v775_v24 }
  0x36   : > { %739 = vmatmul.mubr.msk.bf16.vlgmr.msra.gmra.mrb[0].mxu0 %vm310_vm1, %v446_v25 }
  0xf3   : > { %v348_v26 = vpop.f32.mrb[0].mxu1 }
  0xf4   : > { %v708_v27 = vpop.f32.mrb[1].mxu1 }
  0xf5   : > { %v351_v28 = vpop.f32.mrb[2].mxu1 }
  0xf6   : > { %v709_v29 = vpop.f32.mrb[3].mxu1 }
 0x109   : > { %v520_v30 = vpop.f32.mrb[0].mxu0 }
 0x10a   : > { %v742_v33 = vadd.f32 %v520_v30, %v348_v26  ;;  %v740_v34 = vpop.f32.mrb[1].mxu0 }
 0x10b   : > { %v523_v36 = vpop.f32.mrb[2].mxu0 }
 0x10c   : > { %v534_v37 = vmul.f32 %v742_v33, %v669_v31  ;;  %v741_v39 = vpop.f32.mrb[3].mxu0 }
 0x10e   : > { %v542_v40 = vadd.f32 %v670_v35, %v534_v37 }
 0x110   : > { %v545_v41 = vadd.f32 %v544_v38, %v542_v40 }
 0x112   : > { %v546_v42 = vmax.f32 %v545_v41, 0.0 }
 0x114   : > { %v547_v43 = vpack.c.bf16 %v546_v42, %v546_v42 }
 0x116   : > { %549 = vst.msk [vmem:[%s236_s23] sm:$0x3] %vm548_vm2, %v547_v43 }
 0x117 PF: > { %s15_s18 = sadd.s32 1, %s782_s18  }
 0x118   : > { %p12_p4 = scmp.ge.s32.totalorder %s15_s18, 4  }
 0x11a   :  { %14 = sbr.rel (!%p12_p4) target bundleno = 1 (0x1), region = 75 }

// kernel: _lambda_.13
= control target key start
LH: loop header
LB: loop body
LE: loop exit
PB: predicated region body
PF: predicated region fallthrough
CT: control target
= control target key end

     0   :  { %s731_s15 = smov 0   ;;  %s733_s16 = smov 0   ;;  %s801_s0 = inlined_call_operand.vmem [shape: bf16[32,128], index: 0, kind: input, shape index: {}]   ;;  %s802_s1 = inlined_call_operand.vmem [shape: bf16[128,128], index: 1, kind: input, shape index: {}]   ;;  %s803_s2 = inlined_call_operand.vmem [shape: f32[1,128], index: 2, kind: input, shape index: {}]   ;;  %s804_s3 = inlined_call_operand.vmem [shape: f32[1,128], index: 3, kind: input, shape index: {}]   ;;  %s805_s4 = inlined_call_operand.vmem [shape: bf16[32,128], index: 4, kind: output, shape index: {}]  }
   0x1   :  { %s735_s17 = smov 0  }
   0x2 LB: > { %s33_s18 = sadd.s32 1, %s698_s16  ;;  %p589_p0 = scmp.ge.s32.totalorder %s702_s17, 1  ;;  %s702_s17 = sphi %s735_s17, %s14_s17   ;;  %s698_s16 = sphi %s733_s16, %s807_s16   ;;  %s694_s15 = sphi %s731_s15, %s806_s15  }
   0x3   : > { %p35_p1 = scmp.ge.s32.totalorder %s33_s18, 2  ;;  %p221_p2 = scmp.lt.s32.totalorder %s702_s17, 3 }
   0x5   : > { %s809_s18 = smov (%p35_p1, %s33_s18), 0  ;;  %p222_p3 = pnand %p589_p0, %p221_p2 }
   0x6   : > { %v671_v0 = vld [vmem:[%s802_s1] sm:$0xff] (!%p222_p3)   ;;  %v704_v1 = vmov (!%p222_p3), 0.0   ;;  %v672_v2 = vld [vmem:[%s802_s1 + $0x8] sm:$0xff] (!%p222_p3)   ;;  %vm705_vm0 = vmmov (!%p222_p3), 0   ;;  %s590_s23 = sshll.u32 (!%p222_p3), %s694_s15, 1  ;;  %v673_v3 = vld [vmem:[%s802_s1 + $0x10] sm:$0xff] (!%p222_p3)  }
   0x7   : > { %225 = sbr.rel (%p222_p3) target bundleno = 260 (0x104), region = 36  ;;  %625 = vmatprep.subr.bf16.mxu0 (!%p222_p3), %v704_v1  ;;  %641 = vmatprep.mubr.msk.bf16.mxu0 (!%p222_p3), %vm705_vm0, %v704_v1  ;;  %p268_p4 = scmp.lt.s32.totalorder (!%p222_p3), %s590_s23, 3  ;;  %v674_v4 = vld [vmem:[%s802_s1 + $0x18] sm:$0xff] (!%p222_p3)   ;;  %v675_v5 = vld [vmem:[%s802_s1 + $0x20] sm:$0xff] (!%p222_p3)   ;;  %v676_v6 = vld [vmem:[%s802_s1 + $0x28] sm:$0xff] (!%p222_p3)  }
   0x8   : > { %626 = vmatpush3.bf16.msra.mxu0 (!%p222_p3), %v671_v0  ;;  %v677_v7 = vld [vmem:[%s802_s1 + $0x30] sm:$0xff] (!%p222_p3)   ;;  %v678_v8 = vld [vmem:[%s802_s1 + $0x38] sm:$0xff] (!%p222_p3)   ;;  %v603_v10 = vld [vmem:[%s803_s2] ss:$0 sm:$0xff] (!%p222_p3) }
   0x9   : > { %627 = vmatprep.subr.bf16.mxu0 (!%p222_p3), %v704_v1  ;;  %v604_v14 = vld [vmem:[%s804_s3] ss:$0 sm:$0xff] (!%p222_p3) }
   0xc   : > { %628 = vmatpush3.bf16.msra.mxu0 (!%p222_p3), %v672_v2 }
   0xd   : > { %629 = vmatprep.subr.bf16.mxu0 (!%p222_p3), %v704_v1 }
   0xe   : > { %s811_s23 = smov (!%p268_p4, %s590_s23), 3 }
   0xf   : > { %s591_s26 = sshll.u32 %s811_s23, 2 }
  0x10   : > { %s274_s29 = scalar_lea.vmem %s801_s0, %s591_s26  ;;  %630 = vmatpush3.bf16.msra.mxu0 %v673_v3  ;;  %s298_s24 = scalar_lea.vmem %s805_s4, %s591_s26 }
  0x11   : > { %631 = vmatprep.subr.bf16.mxu0 %v704_v1  ;;  %v679_v9 = vld [vmem:[%s274_s29] sm:$0xff]  }
  0x14   : > { %632 = vmatpush3.bf16.msra.mxu0 %v674_v4 }
  0x15   : > { %633 = vmatprep.subr.bf16.mxu0 %v704_v1 }
  0x18   : > { %634 = vmatpush3.bf16.msra.mxu0 %v675_v5 }
  0x19   : > { %635 = vmatprep.subr.bf16.mxu0 %v704_v1 }
  0x1c   : > { %636 = vmatpush3.bf16.msra.mxu0 %v676_v6 }
  0x1d   : > { %637 = vmatprep.subr.bf16.mxu0 %v704_v1 }
  0x20   : > { %638 = vmatpush3.bf16.msra.mxu0 %v677_v7 }
  0x21   : > { %639 = vmatprep.subr.bf16.mxu0 %v704_v1 }
  0x24   : > { %640 = vmatpush3.bf16.msra.mxu0 %v678_v8 }
  0x27   : > { %642 = vmatmul.mubr.bf16.vlgmr.msra.gmra.mrb[0].mxu0 %v679_v9 }
  0xfa   : > { %v415_v11 = vpop.f32.mrb[0].mxu0 }
  0xfb   : > { %v438_v12 = vmul.f32 %v603_v10, %v415_v11  ;;  %v643_v13 = vpop.f32.mrb[1].mxu0 }
  0xfc   : > { %v418_v15 = vpop.f32.mrb[2].mxu0 }
  0xfd   : > { %v439_v16 = vmul.f32 %v603_v10, %v418_v15  ;;  %v644_v17 = vpop.f32.mrb[3].mxu0  ;;  %v447_v18 = vadd.f32 %v604_v14, %v438_v12 }
  0xff   : > { %v448_v19 = vadd.f32 %v604_v14, %v439_v16 }
 0x101   : > { %v614_v20 = vpack.c.bf16 %v448_v19, %v447_v18 }
 0x103   : > { %615 = vst [vmem:[%s298_s24] sm:$0xff] %v614_v20  }
 0x104 PF: > { %s14_s17 = sadd.s32 1, %s702_s17   ;;  %s806_s15 = smov %s698_s16 }
 0x105   : > { %p11_p5 = scmp.ge.s32.totalorder %s14_s17, 4   ;;  %s807_s16 = smov %s809_s18 }
 0x107   :  { %13 = sbr.rel (!%p11_p5) target bundleno = 2 (0x2), region = 83 }

// kernel: _lambda_.12
= control target key start
LH: loop header
LB: loop body
LE: loop exit
PB: predicated region body
PF: predicated region fallthrough
CT: control target
= control target key end

     0   :  { %s622_s15 = smov 0   ;;  %s682_s0 = inlined_call_operand.vmem [shape: bf16[2,6,48], index: 0, kind: input, shape index: {}]   ;;  %s683_s1 = inlined_call_operand.vmem [shape: bf16[3,48,64], index: 1, kind: input, shape index: {}]   ;;  %s684_s2 = inlined_call_operand.vmem [shape: f32[1,64], index: 2, kind: input, shape index: {}]   ;;  %s685_s3 = inlined_call_operand.vmem [shape: f32[1,64], index: 3, kind: input, shape index: {}]   ;;  %s686_s4 = inlined_call_operand.vmem [shape: bf16[2,4,64], index: 4, kind: output, shape index: {}]  }
   0x1 LB: > { %s484_s16 = sadd.s32 4294967295, %s593_s15   ;;  %p488_p0 = scmp.ge.s32.totalorder %s593_s15, 1  ;;  %s593_s15 = sphi %s622_s15, %s14_s15  }
   0x2   : > { %p161_p1 = scmp.lt.s32.totalorder %s593_s15, 3 }
   0x4   : > { %p162_p2 = pnand %p488_p0, %p161_p1 }
   0x5   : > { %v577_v0 = vld [vmem:[%s683_s1] sm:$0xff] (!%p162_p2)   ;;  %v595_v1 = vmov (!%p162_p2), 0.0   ;;  %v578_v2 = vld [vmem:[%s683_s1 + $0x8] sm:$0xff] (!%p162_p2)   ;;  %vm596_vm0 = vmmov (!%p162_p2), 0   ;;  %p185_p3 = scmp.lt.s32.totalorder (!%p162_p2), %s484_s16, 1  ;;  %v580_v3 = vld [vmem:[%s683_s1 + $0x18] sm:$0xff] (!%p162_p2)  }
   0x6   : > { %165 = sbr.rel (%p162_p2) target bundleno = 253 (0xfd), region = 36  ;;  %542 = vmatprep.subr.bf16.mxu0 (!%p162_p2), %v595_v1  ;;  %532 = vmatprep.subr.bf16.mxu1 (!%p162_p2), %v595_v1  ;;  %v583_v4 = vld [vmem:[%s683_s1 + $0x20] sm:$0xff] (!%p162_p2)   ;;  %v579_v5 = vld [vmem:[%s683_s1 + $0x10] sm:$0xff] (!%p162_p2)   ;;  %v585_v8 = vld [vmem:[%s683_s1 + $0x28] sm:$0xff] (!%p162_p2)   ;;  %vm236_vm1 = vcmask (!%p162_p2), 392192   ;;  %vm429_vm2 = vcmask (!%p162_p2), 517120  }
   0x7   : > { %543 = vmatpush3.bf16.msra.mxu0 (!%p162_p2), %v577_v0  ;;  %548 = vmatprep.mubr.msk.bf16.mxu0 (!%p162_p2), %vm596_vm0, %v595_v1  ;;  %v582_v9 = vld [vmem:[%s683_s1 + $0x30] sm:$0xff] (!%p162_p2)   ;;  %v584_v13 = vld [vmem:[%s683_s1 + $0x38] sm:$0xff] (!%p162_p2)   ;;  %v586_v15 = vld [vmem:[%s683_s1 + $0x40] sm:$0xff] (!%p162_p2)  }
   0x8   : > { %544 = vmatprep.subr.bf16.mxu0 (!%p162_p2), %v595_v1  ;;  %538 = vmatprep.mubr.msk.bf16.mxu1 (!%p162_p2), %vm596_vm0, %v595_v1  ;;  %v516_v22 = vld [vmem:[%s684_s2] ss:$0 sm:$0xff] (!%p162_p2) }
   0x9   : > { %533 = vmatpush3.bf16.msra.mxu1 (!%p162_p2), %v580_v3  ;;  %v517_v25 = vld [vmem:[%s685_s3] ss:$0 sm:$0xff] (!%p162_p2) }
   0xa   : > { %534 = vmatprep.subr.bf16.mxu1 (!%p162_p2), %v595_v1 }
   0xb   : > { %545 = vmatpush3.bf16.msra.mxu0 (!%p162_p2), %v578_v2 }
   0xc   : > { %546 = vmatprep.subr.bf16.mxu0 (!%p162_p2), %v595_v1 }
   0xd   : > { %s688_s16 = smov (!%p185_p3, %s484_s16), 1  ;;  %535 = vmatpush3.bf16.msra.mxu1 %v583_v4 }
   0xe   : > { %s489_s27 = sshll.u32 %s688_s16, 2  ;;  %536 = vmatprep.subr.bf16.mxu1 %v595_v1  ;;  %s490_s19 = sshll.u32 %s688_s16, 1 }
   0xf   : > { %s188_s30 = scalar_lea.vmem %s682_s0, %s489_s27  ;;  %547 = vmatpush3.bf16.msra.mxu0 %v579_v5  ;;  %s192_s22 = scalar_lea.vmem %s686_s4, %s490_s19 }
  0x10   : > { %v194_v6 = vld [vmem:[%s188_s30] sm:$0x7]  ;;  %552 = vmatprep.subr.bf16.mxu0 %v595_v1 }
  0x11   : > { %v497_v7 = vcombine.low %v194_v6, %v194_v6  ;;  %537 = vmatpush3.bf16.msra.mxu1 %v585_v8 }
  0x12   : > { %549 = vmatmul.mubr.msk.bf16.vlgmr.msra.gmra.mrb[0].mxu0 %vm236_vm1, %v194_v6 }
  0x13   : > { %v212_v10 = vshrl.u32 %v497_v7, 16  ;;  %v214_v11 = vshll.u32 %v497_v7, 16  ;;  %553 = vmatpush3.bf16.msra.mxu0 %v582_v9  ;;  %558 = vmatprep.mubr.msk.bf16.mxu0 %vm596_vm0, %v595_v1  ;;  %v348_v16 = vrot.slane %v497_v7, 1 }
  0x14   : > { %554 = vmatprep.subr.bf16.mxu0 %v595_v1 }
  0x15   : > { %v216_v12 = vrot.slane %v214_v11, 1 }
  0x17   : > { %v217_v14 = vor.u32 %v216_v12, %v212_v10  ;;  %555 = vmatpush3.bf16.msra.mxu0 %v584_v13 }
  0x18   : > { %556 = vmatprep.subr.bf16.mxu0 %v595_v1 }
  0x19   : > { %539 = vmatmul.mubr.msk.bf16.vlgmr.msra.gmra.mrb[0].mxu1 %vm236_vm1, %v217_v14 }
  0x1b   : > { %557 = vmatpush3.bf16.msra.mxu0 %v586_v15 }
  0x1e   : > { %559 = vmatmul.mubr.msk.bf16.vlgmr.msra.gmra.mrb[0].mxu0 %vm236_vm1, %v348_v16 }
  0xec   : > { %v274_v17 = vpop.f32.mrb[0].mxu1 }
  0xed   : > { %v540_v18 = vpop.f32.mrb[1].mxu1 }
  0xee   : > { %v277_v19 = vpop.f32.mrb[2].mxu1 }
  0xef   : > { %v541_v20 = vpop.f32.mrb[3].mxu1 }
  0xf1   : > { %v404_v21 = vpop.f32.mrb[0].mxu0 }
  0xf2   : > { %v562_v23 = vadd.f32 %v404_v21, %v274_v17  ;;  %v560_v24 = vpop.f32.mrb[1].mxu0 }
  0xf3   : > { %v407_v26 = vpop.f32.mrb[2].mxu0 }
  0xf4   : > { %v418_v27 = vmul.f32 %v562_v23, %v516_v22  ;;  %v561_v28 = vpop.f32.mrb[3].mxu0 }
  0xf6   : > { %v426_v29 = vadd.f32 %v517_v25, %v418_v27 }
  0xf8   : > { %v427_v30 = vmax.f32 %v426_v29, 0.0 }
  0xfa   : > { %v428_v31 = vpack.c.bf16 %v427_v30, %v427_v30 }
  0xfc   : > { %430 = vst.msk [vmem:[%s192_s22] sm:$0x3] %vm429_vm2, %v428_v31 }
  0xfd PF: > { %s14_s15 = sadd.s32 1, %s593_s15  }
  0xfe   : > { %p11_p4 = scmp.ge.s32.totalorder %s14_s15, 4  }
 0x100   :  { %13 = sbr.rel (!%p11_p4) target bundleno = 1 (0x1), region = 68 }

// kernel: _lambda_.15
= control target key start
LH: loop header
LB: loop body
LE: loop exit
PB: predicated region body
PF: predicated region fallthrough
CT: control target
= control target key end

     0   :  { %v193_v1 = vmov 0.0   ;;  %vm24_vm0 = vcmask 130048   ;;  %vm194_vm1 = vmmov 0   ;;  %s248_s0 = inlined_call_operand.vmem [shape: bf16[2,16,16], index: 0, kind: input, shape index: {}]   ;;  %s249_s1 = inlined_call_operand.vmem [shape: bf16[16,5], index: 1, kind: input, shape index: {}]   ;;  %s250_s2 = inlined_call_operand.vmem [shape: f32[1,5], index: 2, kind: input, shape index: {}]   ;;  %s251_s3 = inlined_call_operand.hbm [shape: f32[2,5], index: 3, kind: output, shape index: {}]  }
   0x1   :  { %v164_v0 = vld [vmem:[%s249_s1] sm:$0xff]   ;;  %155 = vmatprep.subr.bf16.mxu0 %v193_v1  ;;  %v152_v3 = vld [vmem:[%s248_s0 + $0x8] sm:$0xff]   ;;  %157 = vmatprep.mubr.msk.bf16.mxu0 %vm194_vm1, %v193_v1 }
   0x2   :  { %v145_v2 = vld [vmem:[%s248_s0] sm:$0xff]   ;;  %156 = vmatpush3.bf16.msra.mxu0 %v164_v0  ;;  %v150_v6 = vunpack.c.l.bf16 %v152_v3  ;;  %v151_v7 = vunpack.c.h.bf16 %v152_v3 }
   0x3   :  { %v146_v4 = vunpack.c.l.bf16 %v145_v2  ;;  %v147_v5 = vunpack.c.h.bf16 %v145_v2 }
   0x4   :  { %8 = vsyncpa [#allocation3], 0  ;;  %v34_v10 = vsel %vm24_vm0, %v150_v6, 0.0  ;;  %v35_v11 = vsel %vm24_vm0, %v151_v7, 0.0  ;;  %vm61_vm2 = vcmask 1041409   ;;  %vm113_vm3 = vcmask 33792  }
   0x5   :  { %v25_v8 = vsel %vm24_vm0, %v146_v4, 0.0  ;;  %v26_v9 = vsel %vm24_vm0, %v147_v5, 0.0  ;;  %v36_v13 = vadd.f32 %v35_v11, %v34_v10  ;;  %v141_v34 = vld [vmem:[%s250_s2] ss:$0 sm:$0xff]  ;;  %s195_s2 = smov [#allocation2]  }
   0x6   :  { %v27_v12 = vadd.f32 %v26_v9, %v25_v8  ;;  %s133_s18 = sshll.u32 %s195_s2, 4  ;;  %s134_s18 = int_to_ptr.vmem [resolvable:$true] %s133_s18 }
   0x7   :  { %v37_v15 = vrot.slane %v36_v13, 4  ;;  %s169_s19 = scalar_lea.vmem %s134_s18, 32  ;;  %p174_p1 = scmp.lt.s32.totalorder %s134_s18, %s134_s18 }
   0x8   :  { %v28_v14 = vrot.slane %v27_v12, 4  ;;  %p170_p0 = scmp.ne.s32.totalorder %s134_s18, %s169_s19  ;;  %p175_p2 = scmp.lt.s32.totalorder %s169_s19, %s169_s19 }
   0x9   :  { %v38_v17 = vadd.f32 %v37_v15, %v36_v13 }
   0xa   :  { %v29_v16 = vadd.f32 %v28_v14, %v27_v12  ;;  %p176_p3 = por %p175_p2, %p174_p1 }
   0xb   :  { %v39_v19 = vrot.slane %v38_v17, 2 }
   0xc   :  { %v30_v18 = vrot.slane %v29_v16, 2  ;;  %p177_p4 = pnand %p176_p3, %p170_p0 }
   0xd   :  { %v40_v21 = vadd.f32 %v39_v19, %v38_v17 }
   0xe   :  { %v31_v20 = vadd.f32 %v30_v18, %v29_v16 }
   0xf   :  { %v41_v23 = vrot.slane %v40_v21, 1 }
  0x10   :  { %v32_v22 = vrot.slane %v31_v20, 1 }
  0x11   :  { %v42_v25 = vadd.f32 %v41_v23, %v40_v21 }
  0x12   :  { %v33_v24 = vadd.f32 %v32_v22, %v31_v20 }
  0x13   :  { %v45_v27 = vmul.f32 0.0625, %v42_v25 }
  0x14   :  { %v44_v26 = vmul.f32 0.0625, %v33_v24 }
  0x15   :  { %v47_v29 = vpack.c.bf16 %v45_v27, %v45_v27 }
  0x16   :  { %v46_v28 = vpack.c.bf16 %v44_v26, %v44_v26 }
  0x17   :  { %v60_v31 = vunpack.c.l.b16 %v47_v29 }
  0x18   :  { %v59_v30 = vunpack.c.l.b16 %v46_v28 }
  0x1a   :  { %v62_v32 = vsel %vm61_vm2, %v60_v31, %v59_v30 }
  0x1b   :  { %v63_v33 = vpack.c.b16 %v62_v32, %v62_v32 }
  0x1d   :  { %158 = vmatmul.mubr.msk.bf16.vlgmr.msra.gmra.mrb[0].mxu0 %vm24_vm0, %v63_v33 }
  0xf0   :  { %v107_v35 = vpop.f32.mrb[0].mxu0 }
  0xf1   :  { %v108_v36 = vadd.f32 %v141_v34, %v107_v35  ;;  %v159_v37 = vpop.f32.mrb[1].mxu0 }
  0xf2   :  { %v110_v38 = vpop.f32.mrb[2].mxu0 }
  0xf3   :  { %v160_v39 = vpop.f32.mrb[3].mxu0  ;;  %v114_v40 = vsel %vm113_vm3, %v108_v36, -inf }
  0xf4   :  { %115 = vmax.xlane.f32.xlu0 %v114_v40 }
 0x181   :  { %v116_v41 = vpop.xlane.xlu0 %115 }
 0x182   :  { %v117_v42 = vsub.f32 %v108_v36, %v116_v41 }
 0x184   :  { %v118_v43 = vmul.f32 1.442695, %v117_v42 }
 0x186   :  { %165 = vpow2.f32 %v118_v43 }
 0x190   :  { %v166_v44 = vpop.eup %165 }
 0x191   :  { %v120_v45 = vsel %vm113_vm3, %v166_v44, 0.0 }
 0x192   :  { %121 = vadd.xlane.f32.xlu0 %v120_v45 }
 0x21f   :  { %v122_v46 = vpop.xlane.xlu0 %121 }
 0x220   :  { %167 = vlog2.f32 %v122_v46 }
 0x22a   :  { %v168_v47 = vpop.eup %167 }
 0x22b   :  { %v124_v48 = vmul.f32 0.6931472, %v168_v47 }
 0x22d   :  { %v125_v49 = vsub.f32 %v117_v42, %v124_v48 }
 0x22f   :  { %126 = vst.msk [vmem:[#allocation2] sm:$0x3] %vm113_vm3, %v125_v49 }
 0x230   :  { %180 = shalt.err (!%p177_p4)
}
 0x231   :  { %s181_s22 = scalar_lea.hbm %s251_s3, 32 }
 0x232   :  { %p182_p5 = scmp.ne.s32.totalorder %s251_s3, %s181_s22  ;;  %p185_p6 = scmp.lt.u32.totalorder %s181_s22, %s251_s3 }
 0x234   :  { %p187_p7 = pnand %p185_p6, %p182_p5 }
 0x236   :  { %190 = shalt.err (!%p187_p7)
}
 0x237   :  { %136 = dma.vmem_to_hbm [thread:$0]  %s134_s18, 32, %s251_s3, [#allocation3]  }
 0x238   :  { %191 = dma.done.wait [#allocation3], 32  }
 0x239   :  { %192 = vsyncadd [#allocation3], 4294967264 }
 0x23a   :  { %140 = vsyncpa [#allocation3], 1 }

</bundles_post_ra>
